<compile_context>
chip_gen: v7x
topology: tpu7x:2x2x1
jax: 0.10.0
libtpu: 0.0.40
codegen_flags: <defaults>
</compile_context>

<pallas_src>
import functools

import jax
import jax.numpy as jnp
from jax.experimental import pallas as pl
from jax.experimental.pallas import tpu as pltpu

# ModelConfig defaults from the PyTorch module
THRESHOLD = 0.05
BETA = 0.9181805491303656
HIDDEN = 512   # fc1 output size (fixed in the module)
LANE = 128     # TPU lane width; fc2/output columns are padded to this


def _sconv_lstm_step(x_t, xh_ref, syn_ref, w_ref, bias_b, *, cin, co, threshold):
    """One SConv2dLSTM step (fused conv over freq, LSTM gates, maxpool(2,1), fire).

    x_t     : (B, F, cin)        input at this step (raw features or spikes)
    xh_ref  : (B, F+2, cin+co)   zero-halo scratch: [:, 1:F+1, :cin]=input,
                                 [:, 1:F+1, cin:]=membrane (h state), f32
    syn_ref : (B, F, co)         synaptic current (cell state), f32
    w_ref   : (3*(cin+co), 4co)  fused conv weight, bf16, gate cols [i|f|o|g]
    bias_b  : (B*F, 4co)         conv bias already broadcast (hoisted), f32
    """
    B, fp2, cc = xh_ref.shape
    F = fp2 - 2

    # 1) Drop the new input into the halo buffer; the h half already holds
    #    mem_{t-1} (written at the end of the previous step).
    xh_ref[:, 1:F + 1, :cin] = x_t

    # 2) im2col over the 3 freq taps -> a single fused MXU matmul (bf16 in,
    #    f32 accumulate).  Halo rows are permanently zero ('same' padding).
    xh = xh_ref[...]
    op = jnp.concatenate([xh[:, 0:F], xh[:, 1:F + 1], xh[:, 2:F + 2]], axis=-1)
    op = op.reshape(B * F, 3 * cc).astype(jnp.bfloat16)
    acc = jnp.dot(op, w_ref[...], preferred_element_type=jnp.float32) + bias_b
    acc = acc.reshape(B, F, 4 * co)

    # 3) Gates: columns are pre-permuted to [i | f | o | g] at pack time, so
    #    sigmoid / tanh each hit one contiguous slab.
    sig = jax.nn.sigmoid(acc[..., :3 * co])
    g_g = jnp.tanh(acc[..., 3 * co:])
    i_g = sig[..., 0 * co:1 * co]
    f_g = sig[..., 1 * co:2 * co]
    o_g = sig[..., 2 * co:3 * co]

    syn_new = f_g * syn_ref[...] + i_g * g_g
    syn_ref[...] = syn_new
    mem_new = o_g * jnp.tanh(syn_new)

    # Membrane is the recurrent (h) input for the next time step.
    xh_ref[:, 1:F + 1, cin:] = mem_new

    # 4) F.max_pool2d(mem, (2, 1)) over freq, then fire (heaviside(mem - thr)).
    fp = F // 2
    pooled = jnp.max(mem_new[:, :2 * fp, :].reshape(B, fp, 2, co), axis=2)
    spk = (pooled > threshold).astype(jnp.float32)
    return spk


def _classifier_kernel(x_ref,
                       w1, b1, w2, b2, w3, b3, wfc1, bfc1, wfc2, bfc2,
                       spk_out, mem_out,
                       xh1, syn1, xh2, syn2, xh3, syn3, memf1, memf2,
                       *, threshold, beta, cins, cos, tt):
    @pl.when(pl.program_id(0) == 0)
    def _init():
        for ref in (xh1, syn1, xh2, syn2, xh3, syn3, memf1, memf2):
            ref[...] = jnp.zeros_like(ref)

    B = x_ref.shape[1]
    f1 = xh1.shape[1] - 2
    f2 = xh2.shape[1] - 2
    f3 = xh3.shape[1] - 2
    hidden = bfc1.shape[-1]
    c_pad = bfc2.shape[-1]

    # Bias broadcasts hoisted out of the time loop (JAX does not CSE broadcasts).
    b1b = jnp.broadcast_to(b1[...], (B * f1, 4 * cos[0]))
    b2b = jnp.broadcast_to(b2[...], (B * f2, 4 * cos[1]))
    b3b = jnp.broadcast_to(b3[...], (B * f3, 4 * cos[2]))
    bfc1b = jnp.broadcast_to(bfc1[...], (B, hidden))
    bfc2b = jnp.broadcast_to(bfc2[...], (B, c_pad))

    @pl.loop(0, tt)
    def _step(ti):
        x_t = x_ref[ti]  # (B, F, Cin)

        spk1 = _sconv_lstm_step(x_t, xh1, syn1, w1, b1b,
                                cin=cins[0], co=cos[0], threshold=threshold)
        spk2 = _sconv_lstm_step(spk1, xh2, syn2, w2, b2b,
                                cin=cins[1], co=cos[1], threshold=threshold)
        spk3 = _sconv_lstm_step(spk2, xh3, syn3, w3, b3b,
                                cin=cins[2], co=cos[2], threshold=threshold)

        bsz, ff, c3 = spk3.shape
        # wfc1 rows are pre-permuted to this (f, c) flatten order.
        flat = spk3.reshape(bsz, ff * c3).astype(jnp.bfloat16)

        # TODO(synk): dropout1/dropout2 are identity in eval mode; training-time
        # stochastic dropout is not implemented here.
        fc1_out = jnp.dot(flat, wfc1[...], preferred_element_type=jnp.float32) + bfc1b

        # snn.Leaky (reset_mechanism="subtract"): reset derived from previous mem.
        prev1 = memf1[...]
        reset1 = (prev1 > threshold).astype(jnp.float32)
        mf1 = beta * prev1 + fc1_out - reset1 * threshold
        memf1[...] = mf1
        sf1 = (mf1 > threshold).astype(jnp.bfloat16)

        # fc2 columns padded to a full lane width (extra cols are zero weights,
        # so their membrane / spikes stay exactly zero).
        fc2_out = jnp.dot(sf1, wfc2[...], preferred_element_type=jnp.float32) + bfc2b
        prev2 = memf2[...]
        reset2 = (prev2 > threshold).astype(jnp.float32)
        mf2 = beta * prev2 + fc2_out - reset2 * threshold
        memf2[...] = mf2
        sf2 = (mf2 > threshold).astype(jnp.float32)

        # Lane-dense (B, 128) stores into the chunked output blocks.
        spk_out[ti] = sf2
        mem_out[ti] = mf2


def eeg_stft_spike_classifier(x_nchw, packed, *, threshold=THRESHOLD, beta=BETA,
                              time_chunk=32):
    """x_nchw: (B, C_in, F, T) float32 -> (spikes, potentials), each (T, B, num_classes)."""
    B, cin, F, T = x_nchw.shape
    x = jnp.transpose(x_nchw, (3, 0, 2, 1)).astype(jnp.float32)  # (T, B, F, Cin)

    cins = packed['cins']
    cos = packed['cos']
    num_classes = packed['num_classes']
    hidden = packed['bfc1'].shape[-1]
    c_pad = packed['bfc2'].shape[-1]

    # Chunk several timesteps per grid step to amortize per-step grid + DMA cost.
    tt = 1
    for d in range(1, min(T, time_chunk) + 1):
        if T % d == 0:
            tt = d

    weight_names = ['w1', 'b1', 'w2', 'b2', 'w3', 'b3', 'wfc1', 'bfc1', 'wfc2', 'bfc2']
    weights = [packed[n] for n in weight_names]

    def full_spec(a):
        return pl.BlockSpec(a.shape, lambda g, nd=a.ndim: (0,) * nd)

    in_specs = [pl.BlockSpec((tt, B, F, cin), lambda g: (g, 0, 0, 0))]
    in_specs += [full_spec(w) for w in weights]
    # Lane-padded outputs (last dim = c_pad >= 128) -> unmasked, lane-dense
    # stores per step and one dense writeback per chunk; sliced below.
    out_specs = [pl.BlockSpec((tt, B, c_pad), lambda g: (g, 0, 0)),
                 pl.BlockSpec((tt, B, c_pad), lambda g: (g, 0, 0))]

    f1, f2, f3 = F, F // 2, F // 4
    scratch = [
        pltpu.VMEM((B, f1 + 2, cins[0] + cos[0]), jnp.float32),  # xh1 [input|mem], halo
        pltpu.VMEM((B, f1, cos[0]), jnp.float32),                # syn1
        pltpu.VMEM((B, f2 + 2, cins[1] + cos[1]), jnp.float32),  # xh2
        pltpu.VMEM((B, f2, cos[1]), jnp.float32),                # syn2
        pltpu.VMEM((B, f3 + 2, cins[2] + cos[2]), jnp.float32),  # xh3
        pltpu.VMEM((B, f3, cos[2]), jnp.float32),                # syn3
        pltpu.VMEM((B, hidden), jnp.float32),                    # lif1 membrane
        pltpu.VMEM((B, c_pad), jnp.float32),                     # lif2 membrane (padded)
    ]

    kernel = functools.partial(_classifier_kernel, threshold=threshold, beta=beta,
                               cins=cins, cos=cos, tt=tt)
    spk_pad, mem_pad = pl.pallas_call(
        kernel,
        out_shape=(jax.ShapeDtypeStruct((T, B, c_pad), jnp.float32),
                   jax.ShapeDtypeStruct((T, B, c_pad), jnp.float32)),
        grid_spec=pltpu.PrefetchScalarGridSpec(
            num_scalar_prefetch=0,
            grid=(T // tt,),
            in_specs=in_specs,
            out_specs=out_specs,
            scratch_shapes=scratch),
        compiler_params=pltpu.CompilerParams(dimension_semantics=("arbitrary",)),
    )(x, *weights)

    return spk_pad[:, :, :num_classes], mem_pad[:, :, :num_classes]


def init_params(key, input_channels, freq_dim, num_classes=2, hidden=HIDDEN):
    """Deterministic synthetic parameters in PyTorch layout (same shapes as the module)."""
    final_freq = freq_dim // 8
    keys = jax.random.split(key, 10)
    params = {}
    chans = [(input_channels, 16), (16, 32), (32, 64)]
    for l, (ci, co) in enumerate(chans):
        fan_in = (ci + co) * 3 * 3
        bound = 1.0 / float(fan_in) ** 0.5
        params[f'conv{l + 1}_w'] = jax.random.uniform(
            keys[2 * l], (4 * co, ci + co, 3, 3), jnp.float32, -bound, bound)
        params[f'conv{l + 1}_b'] = jax.random.uniform(
            keys[2 * l + 1], (4 * co,), jnp.float32, -bound, bound)

    in_feat = 64 * final_freq
    bound = 1.0 / float(in_feat) ** 0.5
    params['fc1_w'] = jax.random.uniform(keys[6], (hidden, in_feat), jnp.float32, -bound, bound)
    params['fc1_b'] = jax.random.uniform(keys[7], (hidden,), jnp.float32, -bound, bound)
    bound = 1.0 / float(hidden) ** 0.5
    params['fc2_w'] = jax.random.uniform(keys[8], (num_classes, hidden), jnp.float32, -bound, bound)
    params['fc2_b'] = jax.random.uniform(keys[9], (num_classes,), jnp.float32, -bound, bound)
    return params


def pack_params(params, input_channels, freq_dim, num_classes=2, hidden=HIDDEN):
    """Repack torch-layout weights into the kernel's fused / lane-friendly layout."""
    final_freq = freq_dim // 8
    chans = [(input_channels, 16), (16, 32), (32, 64)]
    packed = {}
    for l, (ci, co) in enumerate(chans):
        w_full = params[f'conv{l + 1}_w']          # (4Co, Ci+Co, 3, 3)
        bias = params[f'conv{l + 1}_b']            # (4Co,)
        # Per-step conv input has width 1 with zero padding -> only the centre
        # column of the 3x3 kernel ever multiplies real data; identical result.
        wc = w_full[:, :, :, 1]                    # (4Co, Ci+Co, 3)
        # Reorder gates [i|f|g|o] -> [i|f|o|g] so sigmoid / tanh apply to two
        # contiguous column slabs in the kernel.
        gperm = jnp.concatenate([jnp.arange(0, 2 * co),
                                 jnp.arange(3 * co, 4 * co),
                                 jnp.arange(2 * co, 3 * co)])
        wc = wc[gperm]
        bias = bias[gperm]
        # Fused weight rows: row index = tap*(Ci+Co) + channel, matching the
        # in-kernel im2col operand [tap0(x|h) | tap1(x|h) | tap2(x|h)].
        w_fused = jnp.transpose(wc, (2, 1, 0)).reshape(3 * (ci + co), 4 * co)
        packed[f'w{l + 1}'] = w_fused.astype(jnp.bfloat16)
        packed[f'b{l + 1}'] = bias.reshape(1, 4 * co).astype(jnp.float32)

    in_feat = 64 * final_freq
    # PyTorch flatten(1) on (B, 64, Ff, 1) orders features as c*Ff + f; the
    # kernel flattens (B, Ff, 64) as f*64 + c, so permute fc1 weight rows.
    w1 = params['fc1_w']                           # (hidden, in_feat)
    w1_k = (w1.T.reshape(64, final_freq, hidden)
            .transpose(1, 0, 2).reshape(in_feat, hidden))
    packed['wfc1'] = w1_k.astype(jnp.bfloat16)
    packed['bfc1'] = params['fc1_b'].reshape(1, hidden).astype(jnp.float32)

    # Pad fc2 output columns to a full lane width; padded columns have zero
    # weight/bias so their membrane & spikes remain exactly zero.
    c_pad = ((num_classes + LANE - 1) // LANE) * LANE
    w2 = params['fc2_w'].T                         # (hidden, num_classes)
    w2p = jnp.zeros((hidden, c_pad), jnp.float32).at[:, :num_classes].set(w2)
    b2p = jnp.zeros((1, c_pad), jnp.float32).at[0, :num_classes].set(params['fc2_b'])
    packed['wfc2'] = w2p.astype(jnp.bfloat16)
    packed['bfc2'] = b2p

    packed['cins'] = tuple(ci for ci, _ in chans)
    packed['cos'] = tuple(co for _, co in chans)
    packed['num_classes'] = num_classes
    return packed


if __name__ == "__main__":
    # Small shapes consistent with the module's constructor arguments:
    # batch=2, input_channels=4, freq_dim=16 (divisible by 8), time_steps=8.
    B, C_IN, FREQ, T = 2, 4, 16, 8
    NUM_CLASSES = 2

    key = jax.random.PRNGKey(0)
    kx, kp = jax.random.split(key)
    x = jax.random.normal(kx, (B, C_IN, FREQ, T), jnp.float32)
    torch_params = init_params(kp, input_channels=C_IN, freq_dim=FREQ,
                               num_classes=NUM_CLASSES, hidden=HIDDEN)
    packed = pack_params(torch_params, input_channels=C_IN, freq_dim=FREQ,
                         num_classes=NUM_CLASSES, hidden=HIDDEN)

    spk, mem = eeg_stft_spike_classifier(x, packed)
    jax.block_until_ready((spk, mem))

    assert spk.shape == (T, B, NUM_CLASSES), spk.shape
    assert mem.shape == (T, B, NUM_CLASSES), mem.shape
    assert bool(jnp.all(jnp.isfinite(mem)))
    print("KERNEL_OK")
</pallas_src>

<mosaic_0001>
module attributes {stable_mosaic.version = 11 : i64} {
  func.func @_classifier_kernel(%arg0: i32, %arg1: memref<8x2x16x4xf32, #tpu.memory_space<vmem>>, %arg2: memref<60x64xbf16, #tpu.memory_space<vmem>>, %arg3: memref<1x64xf32, #tpu.memory_space<vmem>>, %arg4: memref<144x128xbf16, #tpu.memory_space<vmem>>, %arg5: memref<1x128xf32, #tpu.memory_space<vmem>>, %arg6: memref<288x256xbf16, #tpu.memory_space<vmem>>, %arg7: memref<1x256xf32, #tpu.memory_space<vmem>>, %arg8: memref<128x512xbf16, #tpu.memory_space<vmem>>, %arg9: memref<1x512xf32, #tpu.memory_space<vmem>>, %arg10: memref<512x128xbf16, #tpu.memory_space<vmem>>, %arg11: memref<1x128xf32, #tpu.memory_space<vmem>>, %arg12: memref<8x2x128xf32, #tpu.memory_space<vmem>>, %arg13: memref<8x2x128xf32, #tpu.memory_space<vmem>>, %arg14: memref<2x18x20xf32, #tpu.memory_space<vmem>>, %arg15: memref<2x16x16xf32, #tpu.memory_space<vmem>>, %arg16: memref<2x10x48xf32, #tpu.memory_space<vmem>>, %arg17: memref<2x8x32xf32, #tpu.memory_space<vmem>>, %arg18: memref<2x6x96xf32, #tpu.memory_space<vmem>>, %arg19: memref<2x4x64xf32, #tpu.memory_space<vmem>>, %arg20: memref<2x512xf32, #tpu.memory_space<vmem>>, %arg21: memref<2x128xf32, #tpu.memory_space<vmem>>) attributes {dimension_semantics = [#tpu.dimension_semantics<arbitrary>], iteration_bounds = array<i64: 1>, scalar_prefetch = 0 : i64, scratch_operands = 8 : i64, tpu.core_type = #tpu.core_type<tc>, window_params = [{transform_indices = @transform_0, window_bounds = array<i64: 8, 2, 16, 4>}, {pipeline_mode = #tpu.pipeline_mode<synchronous>, transform_indices = @transform_1, window_bounds = array<i64: 60, 64>}, {pipeline_mode = #tpu.pipeline_mode<synchronous>, transform_indices = @transform_2, window_bounds = array<i64: 1, 64>}, {pipeline_mode = #tpu.pipeline_mode<synchronous>, transform_indices = @transform_3, window_bounds = array<i64: 144, 128>}, {pipeline_mode = #tpu.pipeline_mode<synchronous>, transform_indices = @transform_4, window_bounds = array<i64: 1, 128>}, {pipeline_mode = #tpu.pipeline_mode<synchronous>, transform_indices = @transform_5, window_bounds = array<i64: 288, 256>}, {pipeline_mode = #tpu.pipeline_mode<synchronous>, transform_indices = @transform_6, window_bounds = array<i64: 1, 256>}, {pipeline_mode = #tpu.pipeline_mode<synchronous>, transform_indices = @transform_7, window_bounds = array<i64: 128, 512>}, {pipeline_mode = #tpu.pipeline_mode<synchronous>, transform_indices = @transform_8, window_bounds = array<i64: 1, 512>}, {pipeline_mode = #tpu.pipeline_mode<synchronous>, transform_indices = @transform_9, window_bounds = array<i64: 512, 128>}, {pipeline_mode = #tpu.pipeline_mode<synchronous>, transform_indices = @transform_10, window_bounds = array<i64: 1, 128>}, {transform_indices = @transform_11, window_bounds = array<i64: 8, 2, 128>}, {transform_indices = @transform_12, window_bounds = array<i64: 8, 2, 128>}]} {
    %c0_i32 = arith.constant 0 : i32
    %0 = arith.cmpi eq, %arg0, %c0_i32 : i32
    %1 = arith.extui %0 : i1 to i32
    %c0_i32_0 = arith.constant 0 : i32
    %2 = arith.cmpi ne, %1, %c0_i32_0 : i32
    scf.if %2 {
      %cst = arith.constant 0.000000e+00 : f32
      %19 = vector.broadcast %cst : f32 to vector<2x18x20xf32>
      %c0_12 = arith.constant 0 : index
      %c0_13 = arith.constant 0 : index
      %c0_14 = arith.constant 0 : index
      %20 = vector.load %arg14[%c0_12, %c0_13, %c0_14] : memref<2x18x20xf32, #tpu.memory_space<vmem>>, vector<2x18x20xf32>
      tpu.vector_store %arg14[%c0_12, %c0_13, %c0_14], %19 {strides = array<i32>} : memref<2x18x20xf32, #tpu.memory_space<vmem>>, vector<2x18x20xf32>,
      %cst_15 = arith.constant 0.000000e+00 : f32
      %21 = vector.broadcast %cst_15 : f32 to vector<2x16x16xf32>
      %c0_16 = arith.constant 0 : index
      %c0_17 = arith.constant 0 : index
      %c0_18 = arith.constant 0 : index
      %22 = vector.load %arg15[%c0_16, %c0_17, %c0_18] : memref<2x16x16xf32, #tpu.memory_space<vmem>>, vector<2x16x16xf32>
      tpu.vector_store %arg15[%c0_16, %c0_17, %c0_18], %21 {strides = array<i32>} : memref<2x16x16xf32, #tpu.memory_space<vmem>>, vector<2x16x16xf32>,
      %cst_19 = arith.constant 0.000000e+00 : f32
      %23 = vector.broadcast %cst_19 : f32 to vector<2x10x48xf32>
      %c0_20 = arith.constant 0 : index
      %c0_21 = arith.constant 0 : index
      %c0_22 = arith.constant 0 : index
      %24 = vector.load %arg16[%c0_20, %c0_21, %c0_22] : memref<2x10x48xf32, #tpu.memory_space<vmem>>, vector<2x10x48xf32>
      tpu.vector_store %arg16[%c0_20, %c0_21, %c0_22], %23 {strides = array<i32>} : memref<2x10x48xf32, #tpu.memory_space<vmem>>, vector<2x10x48xf32>,
      %cst_23 = arith.constant 0.000000e+00 : f32
      %25 = vector.broadcast %cst_23 : f32 to vector<2x8x32xf32>
      %c0_24 = arith.constant 0 : index
      %c0_25 = arith.constant 0 : index
      %c0_26 = arith.constant 0 : index
      %26 = vector.load %arg17[%c0_24, %c0_25, %c0_26] : memref<2x8x32xf32, #tpu.memory_space<vmem>>, vector<2x8x32xf32>
      tpu.vector_store %arg17[%c0_24, %c0_25, %c0_26], %25 {strides = array<i32>} : memref<2x8x32xf32, #tpu.memory_space<vmem>>, vector<2x8x32xf32>,
      %cst_27 = arith.constant 0.000000e+00 : f32
      %27 = vector.broadcast %cst_27 : f32 to vector<2x6x96xf32>
      %c0_28 = arith.constant 0 : index
      %c0_29 = arith.constant 0 : index
      %c0_30 = arith.constant 0 : index
      %28 = vector.load %arg18[%c0_28, %c0_29, %c0_30] : memref<2x6x96xf32, #tpu.memory_space<vmem>>, vector<2x6x96xf32>
      tpu.vector_store %arg18[%c0_28, %c0_29, %c0_30], %27 {strides = array<i32>} : memref<2x6x96xf32, #tpu.memory_space<vmem>>, vector<2x6x96xf32>,
      %cst_31 = arith.constant 0.000000e+00 : f32
      %29 = vector.broadcast %cst_31 : f32 to vector<2x4x64xf32>
      %c0_32 = arith.constant 0 : index
      %c0_33 = arith.constant 0 : index
      %c0_34 = arith.constant 0 : index
      %30 = vector.load %arg19[%c0_32, %c0_33, %c0_34] : memref<2x4x64xf32, #tpu.memory_space<vmem>>, vector<2x4x64xf32>
      tpu.vector_store %arg19[%c0_32, %c0_33, %c0_34], %29 {strides = array<i32>} : memref<2x4x64xf32, #tpu.memory_space<vmem>>, vector<2x4x64xf32>,
      %cst_35 = arith.constant 0.000000e+00 : f32
      %31 = vector.broadcast %cst_35 : f32 to vector<2x512xf32>
      %c0_36 = arith.constant 0 : index
      %c0_37 = arith.constant 0 : index
      %32 = vector.load %arg20[%c0_36, %c0_37] : memref<2x512xf32, #tpu.memory_space<vmem>>, vector<2x512xf32>
      tpu.vector_store %arg20[%c0_36, %c0_37], %31 {strides = array<i32>} : memref<2x512xf32, #tpu.memory_space<vmem>>, vector<2x512xf32>,
      %cst_38 = arith.constant 0.000000e+00 : f32
      %33 = vector.broadcast %cst_38 : f32 to vector<2x128xf32>
      %c0_39 = arith.constant 0 : index
      %c0_40 = arith.constant 0 : index
      %34 = vector.load %arg21[%c0_39, %c0_40] : memref<2x128xf32, #tpu.memory_space<vmem>>, vector<2x128xf32>
      tpu.vector_store %arg21[%c0_39, %c0_40], %33 {strides = array<i32>} : memref<2x128xf32, #tpu.memory_space<vmem>>, vector<2x128xf32>,
    } else {
    }
    %c0 = arith.constant 0 : index
    %c0_1 = arith.constant 0 : index
    %3 = vector.load %arg3[%c0, %c0_1] : memref<1x64xf32, #tpu.memory_space<vmem>>, vector<1x64xf32>
    %4 = vector.shape_cast %3 : vector<1x64xf32> to vector<1x64xf32>
    %5 = vector.broadcast %4 : vector<1x64xf32> to vector<32x64xf32>
    %c0_2 = arith.constant 0 : index
    %c0_3 = arith.constant 0 : index
    %6 = vector.load %arg5[%c0_2, %c0_3] : memref<1x128xf32, #tpu.memory_space<vmem>>, vector<1x128xf32>
    %7 = vector.shape_cast %6 : vector<1x128xf32> to vector<1x128xf32>
    %8 = vector.broadcast %7 : vector<1x128xf32> to vector<16x128xf32>
    %c0_4 = arith.constant 0 : index
    %c0_5 = arith.constant 0 : index
    %9 = vector.load %arg7[%c0_4, %c0_5] : memref<1x256xf32, #tpu.memory_space<vmem>>, vector<1x256xf32>
    %10 = vector.shape_cast %9 : vector<1x256xf32> to vector<1x256xf32>
    %11 = vector.broadcast %10 : vector<1x256xf32> to vector<8x256xf32>
    %c0_6 = arith.constant 0 : index
    %c0_7 = arith.constant 0 : index
    %12 = vector.load %arg9[%c0_6, %c0_7] : memref<1x512xf32, #tpu.memory_space<vmem>>, vector<1x512xf32>
    %13 = vector.shape_cast %12 : vector<1x512xf32> to vector<1x512xf32>
    %14 = vector.broadcast %13 : vector<1x512xf32> to vector<2x512xf32>
    %c0_8 = arith.constant 0 : index
    %c0_9 = arith.constant 0 : index
    %15 = vector.load %arg11[%c0_8, %c0_9] : memref<1x128xf32, #tpu.memory_space<vmem>>, vector<1x128xf32>
    %16 = vector.shape_cast %15 : vector<1x128xf32> to vector<1x128xf32>
    %17 = vector.broadcast %16 : vector<1x128xf32> to vector<2x128xf32>
    %c0_i32_10 = arith.constant 0 : i32
    %c8_i32 = arith.constant 8 : i32
    %18 = arith.addi %c0_i32_10, %c8_i32 : i32
    %c1_i32 = arith.constant 1 : i32
    scf.for %arg22 = %c0_i32_10 to %18 step %c1_i32  : i32 {
      %c1_i32_12 = arith.constant 1 : i32
      %19 = arith.muli %arg22, %c1_i32_12 : i32
      %c0_i32_13 = arith.constant 0 : i32
      %20 = arith.addi %c0_i32_13, %19 : i32
      %21 = arith.index_cast %20 : i32 to index
      %c0_14 = arith.constant 0 : index
      %c0_15 = arith.constant 0 : index
      %c0_16 = arith.constant 0 : index
      %22 = vector.load %arg1[%21, %c0_14, %c0_15, %c0_16] : memref<8x2x16x4xf32, #tpu.memory_space<vmem>>, vector<1x2x16x4xf32>
      %23 = vector.shape_cast %22 : vector<1x2x16x4xf32> to vector<2x16x4xf32>
      %c0_17 = arith.constant 0 : index
      %c1 = arith.constant 1 : index
      %c0_18 = arith.constant 0 : index
      %24 = vector.load %arg14[%c0_17, %c1, %c0_18] : memref<2x18x20xf32, #tpu.memory_space<vmem>>, vector<2x16x4xf32>
      tpu.vector_store %arg14[%c0_17, %c1, %c0_18], %23 {strides = array<i32>} : memref<2x18x20xf32, #tpu.memory_space<vmem>>, vector<2x16x4xf32>,
      %c0_19 = arith.constant 0 : index
      %c0_20 = arith.constant 0 : index
      %c0_21 = arith.constant 0 : index
      %25 = vector.load %arg14[%c0_19, %c0_20, %c0_21] : memref<2x18x20xf32, #tpu.memory_space<vmem>>, vector<2x18x20xf32>
      %26 = vector.extract_strided_slice %25 {offsets = [0, 0, 0], sizes = [2, 16, 20], strides = [1, 1, 1]} : vector<2x18x20xf32> to vector<2x16x20xf32>
      %27 = vector.extract_strided_slice %25 {offsets = [0, 1, 0], sizes = [2, 16, 20], strides = [1, 1, 1]} : vector<2x18x20xf32> to vector<2x16x20xf32>
      %28 = vector.extract_strided_slice %25 {offsets = [0, 2, 0], sizes = [2, 16, 20], strides = [1, 1, 1]} : vector<2x18x20xf32> to vector<2x16x20xf32>
      %29 = tpu.concatenate %26, %27, %28 in 2 : vector<2x16x20xf32>, vector<2x16x20xf32>, vector<2x16x20xf32> -> vector<2x16x60xf32>
      %30 = vector.shape_cast %29 : vector<2x16x60xf32> to vector<32x60xf32>
      %31 = arith.truncf %30 : vector<32x60xf32> to vector<32x60xbf16>
      %c0_22 = arith.constant 0 : index
      %c0_23 = arith.constant 0 : index
      %32 = vector.load %arg2[%c0_22, %c0_23] : memref<60x64xbf16, #tpu.memory_space<vmem>>, vector<60x64xbf16>
      %cst = arith.constant dense<0.000000e+00> : vector<32x64xf32>
      %33 = tpu.matmul %31, %32, %cst {dimension_numbers = #tpu.dot_dimension_numbers<[1], [0], [0], [1], [0, 0, 1, 1], [], []>} : vector<32x60xbf16>, vector<60x64xbf16>, vector<32x64xf32> -> vector<32x64xf32>
      %34 = arith.addf %33, %5 : vector<32x64xf32>
      %35 = vector.shape_cast %34 : vector<32x64xf32> to vector<2x16x64xf32>
      %36 = vector.extract_strided_slice %35 {offsets = [0, 0, 0], sizes = [2, 16, 48], strides = [1, 1, 1]} : vector<2x16x64xf32> to vector<2x16x48xf32>
      %37 = arith.negf %36 : vector<2x16x48xf32>
      %38 = math.exp %37 : vector<2x16x48xf32>
      %cst_24 = arith.constant 1.000000e+00 : f32
      %39 = vector.broadcast %cst_24 : f32 to vector<2x16x48xf32>
      %40 = arith.addf %39, %38 : vector<2x16x48xf32>
      %41 = arith.divf %39, %40 : vector<2x16x48xf32>
      %42 = vector.extract_strided_slice %35 {offsets = [0, 0, 48], sizes = [2, 16, 16], strides = [1, 1, 1]} : vector<2x16x64xf32> to vector<2x16x16xf32>
      %43 = math.tanh %42 : vector<2x16x16xf32>
      %44 = vector.extract_strided_slice %41 {offsets = [0, 0, 0], sizes = [2, 16, 16], strides = [1, 1, 1]} : vector<2x16x48xf32> to vector<2x16x16xf32>
      %45 = vector.extract_strided_slice %41 {offsets = [0, 0, 16], sizes = [2, 16, 16], strides = [1, 1, 1]} : vector<2x16x48xf32> to vector<2x16x16xf32>
      %46 = vector.extract_strided_slice %41 {offsets = [0, 0, 32], sizes = [2, 16, 16], strides = [1, 1, 1]} : vector<2x16x48xf32> to vector<2x16x16xf32>
      %c0_25 = arith.constant 0 : index
      %c0_26 = arith.constant 0 : index
      %c0_27 = arith.constant 0 : index
      %47 = vector.load %arg15[%c0_25, %c0_26, %c0_27] : memref<2x16x16xf32, #tpu.memory_space<vmem>>, vector<2x16x16xf32>
      %48 = arith.mulf %45, %47 : vector<2x16x16xf32>
      %49 = arith.mulf %44, %43 : vector<2x16x16xf32>
      %50 = arith.addf %48, %49 : vector<2x16x16xf32>
      %c0_28 = arith.constant 0 : index
      %c0_29 = arith.constant 0 : index
      %c0_30 = arith.constant 0 : index
      %51 = vector.load %arg15[%c0_28, %c0_29, %c0_30] : memref<2x16x16xf32, #tpu.memory_space<vmem>>, vector<2x16x16xf32>
      tpu.vector_store %arg15[%c0_28, %c0_29, %c0_30], %50 {strides = array<i32>} : memref<2x16x16xf32, #tpu.memory_space<vmem>>, vector<2x16x16xf32>,
      %52 = math.tanh %50 : vector<2x16x16xf32>
      %53 = arith.mulf %46, %52 : vector<2x16x16xf32>
      %c0_31 = arith.constant 0 : index
      %c1_32 = arith.constant 1 : index
      %c4 = arith.constant 4 : index
      %54 = vector.load %arg14[%c0_31, %c1_32, %c4] : memref<2x18x20xf32, #tpu.memory_space<vmem>>, vector<2x16x16xf32>
      tpu.vector_store %arg14[%c0_31, %c1_32, %c4], %53 {strides = array<i32>} : memref<2x18x20xf32, #tpu.memory_space<vmem>>, vector<2x16x16xf32>,
      %55 = vector.shape_cast %53 : vector<2x16x16xf32> to vector<2x8x2x16xf32>
      %cst_33 = arith.constant dense<0xFF800000> : vector<2x8x16xf32>
      %56 = vector.multi_reduction <maximumf>, %55, %cst_33 [2] : vector<2x8x2x16xf32> to vector<2x8x16xf32>
      %cst_34 = arith.constant 5.000000e-02 : f32
      %57 = vector.broadcast %cst_34 : f32 to vector<2x8x16xf32>
      %58 = arith.cmpf ogt, %56, %57 : vector<2x8x16xf32>
      %59 = arith.extui %58 : vector<2x8x16xi1> to vector<2x8x16xi32>
      %60 = arith.sitofp %59 : vector<2x8x16xi32> to vector<2x8x16xf32>
      %c0_35 = arith.constant 0 : index
      %c1_36 = arith.constant 1 : index
      %c0_37 = arith.constant 0 : index
      %61 = vector.load %arg16[%c0_35, %c1_36, %c0_37] : memref<2x10x48xf32, #tpu.memory_space<vmem>>, vector<2x8x16xf32>
      tpu.vector_store %arg16[%c0_35, %c1_36, %c0_37], %60 {strides = array<i32>} : memref<2x10x48xf32, #tpu.memory_space<vmem>>, vector<2x8x16xf32>,
      %c0_38 = arith.constant 0 : index
      %c0_39 = arith.constant 0 : index
      %c0_40 = arith.constant 0 : index
      %62 = vector.load %arg16[%c0_38, %c0_39, %c0_40] : memref<2x10x48xf32, #tpu.memory_space<vmem>>, vector<2x10x48xf32>
      %63 = vector.extract_strided_slice %62 {offsets = [0, 0, 0], sizes = [2, 8, 48], strides = [1, 1, 1]} : vector<2x10x48xf32> to vector<2x8x48xf32>
      %64 = vector.extract_strided_slice %62 {offsets = [0, 1, 0], sizes = [2, 8, 48], strides = [1, 1, 1]} : vector<2x10x48xf32> to vector<2x8x48xf32>
      %65 = vector.extract_strided_slice %62 {offsets = [0, 2, 0], sizes = [2, 8, 48], strides = [1, 1, 1]} : vector<2x10x48xf32> to vector<2x8x48xf32>
      %66 = tpu.concatenate %63, %64, %65 in 2 : vector<2x8x48xf32>, vector<2x8x48xf32>, vector<2x8x48xf32> -> vector<2x8x144xf32>
      %67 = vector.shape_cast %66 : vector<2x8x144xf32> to vector<16x144xf32>
      %68 = arith.truncf %67 : vector<16x144xf32> to vector<16x144xbf16>
      %c0_41 = arith.constant 0 : index
      %c0_42 = arith.constant 0 : index
      %69 = vector.load %arg4[%c0_41, %c0_42] : memref<144x128xbf16, #tpu.memory_space<vmem>>, vector<144x128xbf16>
      %cst_43 = arith.constant dense<0.000000e+00> : vector<16x128xf32>
      %70 = tpu.matmul %68, %69, %cst_43 {dimension_numbers = #tpu.dot_dimension_numbers<[1], [0], [0], [1], [0, 0, 1, 1], [], []>} : vector<16x144xbf16>, vector<144x128xbf16>, vector<16x128xf32> -> vector<16x128xf32>
      %71 = arith.addf %70, %8 : vector<16x128xf32>
      %72 = vector.shape_cast %71 : vector<16x128xf32> to vector<2x8x128xf32>
      %73 = vector.extract_strided_slice %72 {offsets = [0, 0, 0], sizes = [2, 8, 96], strides = [1, 1, 1]} : vector<2x8x128xf32> to vector<2x8x96xf32>
      %74 = arith.negf %73 : vector<2x8x96xf32>
      %75 = math.exp %74 : vector<2x8x96xf32>
      %cst_44 = arith.constant 1.000000e+00 : f32
      %76 = vector.broadcast %cst_44 : f32 to vector<2x8x96xf32>
      %77 = arith.addf %76, %75 : vector<2x8x96xf32>
      %78 = arith.divf %76, %77 : vector<2x8x96xf32>
      %79 = vector.extract_strided_slice %72 {offsets = [0, 0, 96], sizes = [2, 8, 32], strides = [1, 1, 1]} : vector<2x8x128xf32> to vector<2x8x32xf32>
      %80 = math.tanh %79 : vector<2x8x32xf32>
      %81 = vector.extract_strided_slice %78 {offsets = [0, 0, 0], sizes = [2, 8, 32], strides = [1, 1, 1]} : vector<2x8x96xf32> to vector<2x8x32xf32>
      %82 = vector.extract_strided_slice %78 {offsets = [0, 0, 32], sizes = [2, 8, 32], strides = [1, 1, 1]} : vector<2x8x96xf32> to vector<2x8x32xf32>
      %83 = vector.extract_strided_slice %78 {offsets = [0, 0, 64], sizes = [2, 8, 32], strides = [1, 1, 1]} : vector<2x8x96xf32> to vector<2x8x32xf32>
      %c0_45 = arith.constant 0 : index
      %c0_46 = arith.constant 0 : index
      %c0_47 = arith.constant 0 : index
      %84 = vector.load %arg17[%c0_45, %c0_46, %c0_47] : memref<2x8x32xf32, #tpu.memory_space<vmem>>, vector<2x8x32xf32>
      %85 = arith.mulf %82, %84 : vector<2x8x32xf32>
      %86 = arith.mulf %81, %80 : vector<2x8x32xf32>
      %87 = arith.addf %85, %86 : vector<2x8x32xf32>
      %c0_48 = arith.constant 0 : index
      %c0_49 = arith.constant 0 : index
      %c0_50 = arith.constant 0 : index
      %88 = vector.load %arg17[%c0_48, %c0_49, %c0_50] : memref<2x8x32xf32, #tpu.memory_space<vmem>>, vector<2x8x32xf32>
      tpu.vector_store %arg17[%c0_48, %c0_49, %c0_50], %87 {strides = array<i32>} : memref<2x8x32xf32, #tpu.memory_space<vmem>>, vector<2x8x32xf32>,
      %89 = math.tanh %87 : vector<2x8x32xf32>
      %90 = arith.mulf %83, %89 : vector<2x8x32xf32>
      %c0_51 = arith.constant 0 : index
      %c1_52 = arith.constant 1 : index
      %c16 = arith.constant 16 : index
      %91 = vector.load %arg16[%c0_51, %c1_52, %c16] : memref<2x10x48xf32, #tpu.memory_space<vmem>>, vector<2x8x32xf32>
      tpu.vector_store %arg16[%c0_51, %c1_52, %c16], %90 {strides = array<i32>} : memref<2x10x48xf32, #tpu.memory_space<vmem>>, vector<2x8x32xf32>,
      %92 = vector.shape_cast %90 : vector<2x8x32xf32> to vector<2x4x2x32xf32>
      %cst_53 = arith.constant dense<0xFF800000> : vector<2x4x32xf32>
      %93 = vector.multi_reduction <maximumf>, %92, %cst_53 [2] : vector<2x4x2x32xf32> to vector<2x4x32xf32>
      %cst_54 = arith.constant 5.000000e-02 : f32
      %94 = vector.broadcast %cst_54 : f32 to vector<2x4x32xf32>
      %95 = arith.cmpf ogt, %93, %94 : vector<2x4x32xf32>
      %96 = arith.extui %95 : vector<2x4x32xi1> to vector<2x4x32xi32>
      %97 = arith.sitofp %96 : vector<2x4x32xi32> to vector<2x4x32xf32>
      %c0_55 = arith.constant 0 : index
      %c1_56 = arith.constant 1 : index
      %c0_57 = arith.constant 0 : index
      %98 = vector.load %arg18[%c0_55, %c1_56, %c0_57] : memref<2x6x96xf32, #tpu.memory_space<vmem>>, vector<2x4x32xf32>
      tpu.vector_store %arg18[%c0_55, %c1_56, %c0_57], %97 {strides = array<i32>} : memref<2x6x96xf32, #tpu.memory_space<vmem>>, vector<2x4x32xf32>,
      %c0_58 = arith.constant 0 : index
      %c0_59 = arith.constant 0 : index
      %c0_60 = arith.constant 0 : index
      %99 = vector.load %arg18[%c0_58, %c0_59, %c0_60] : memref<2x6x96xf32, #tpu.memory_space<vmem>>, vector<2x6x96xf32>
      %100 = vector.extract_strided_slice %99 {offsets = [0, 0, 0], sizes = [2, 4, 96], strides = [1, 1, 1]} : vector<2x6x96xf32> to vector<2x4x96xf32>
      %101 = vector.extract_strided_slice %99 {offsets = [0, 1, 0], sizes = [2, 4, 96], strides = [1, 1, 1]} : vector<2x6x96xf32> to vector<2x4x96xf32>
      %102 = vector.extract_strided_slice %99 {offsets = [0, 2, 0], sizes = [2, 4, 96], strides = [1, 1, 1]} : vector<2x6x96xf32> to vector<2x4x96xf32>
      %103 = tpu.concatenate %100, %101, %102 in 2 : vector<2x4x96xf32>, vector<2x4x96xf32>, vector<2x4x96xf32> -> vector<2x4x288xf32>
      %104 = vector.shape_cast %103 : vector<2x4x288xf32> to vector<8x288xf32>
      %105 = arith.truncf %104 : vector<8x288xf32> to vector<8x288xbf16>
      %c0_61 = arith.constant 0 : index
      %c0_62 = arith.constant 0 : index
      %106 = vector.load %arg6[%c0_61, %c0_62] : memref<288x256xbf16, #tpu.memory_space<vmem>>, vector<288x256xbf16>
      %cst_63 = arith.constant dense<0.000000e+00> : vector<8x256xf32>
      %107 = tpu.matmul %105, %106, %cst_63 {dimension_numbers = #tpu.dot_dimension_numbers<[1], [0], [0], [1], [0, 0, 1, 1], [], []>} : vector<8x288xbf16>, vector<288x256xbf16>, vector<8x256xf32> -> vector<8x256xf32>
      %108 = arith.addf %107, %11 : vector<8x256xf32>
      %109 = vector.shape_cast %108 : vector<8x256xf32> to vector<2x4x256xf32>
      %110 = vector.extract_strided_slice %109 {offsets = [0, 0, 0], sizes = [2, 4, 192], strides = [1, 1, 1]} : vector<2x4x256xf32> to vector<2x4x192xf32>
      %111 = arith.negf %110 : vector<2x4x192xf32>
      %112 = math.exp %111 : vector<2x4x192xf32>
      %cst_64 = arith.constant 1.000000e+00 : f32
      %113 = vector.broadcast %cst_64 : f32 to vector<2x4x192xf32>
      %114 = arith.addf %113, %112 : vector<2x4x192xf32>
      %115 = arith.divf %113, %114 : vector<2x4x192xf32>
      %116 = vector.extract_strided_slice %109 {offsets = [0, 0, 192], sizes = [2, 4, 64], strides = [1, 1, 1]} : vector<2x4x256xf32> to vector<2x4x64xf32>
      %117 = math.tanh %116 : vector<2x4x64xf32>
      %118 = vector.extract_strided_slice %115 {offsets = [0, 0, 0], sizes = [2, 4, 64], strides = [1, 1, 1]} : vector<2x4x192xf32> to vector<2x4x64xf32>
      %119 = vector.extract_strided_slice %115 {offsets = [0, 0, 64], sizes = [2, 4, 64], strides = [1, 1, 1]} : vector<2x4x192xf32> to vector<2x4x64xf32>
      %120 = vector.extract_strided_slice %115 {offsets = [0, 0, 128], sizes = [2, 4, 64], strides = [1, 1, 1]} : vector<2x4x192xf32> to vector<2x4x64xf32>
      %c0_65 = arith.constant 0 : index
      %c0_66 = arith.constant 0 : index
      %c0_67 = arith.constant 0 : index
      %121 = vector.load %arg19[%c0_65, %c0_66, %c0_67] : memref<2x4x64xf32, #tpu.memory_space<vmem>>, vector<2x4x64xf32>
      %122 = arith.mulf %119, %121 : vector<2x4x64xf32>
      %123 = arith.mulf %118, %117 : vector<2x4x64xf32>
      %124 = arith.addf %122, %123 : vector<2x4x64xf32>
      %c0_68 = arith.constant 0 : index
      %c0_69 = arith.constant 0 : index
      %c0_70 = arith.constant 0 : index
      %125 = vector.load %arg19[%c0_68, %c0_69, %c0_70] : memref<2x4x64xf32, #tpu.memory_space<vmem>>, vector<2x4x64xf32>
      tpu.vector_store %arg19[%c0_68, %c0_69, %c0_70], %124 {strides = array<i32>} : memref<2x4x64xf32, #tpu.memory_space<vmem>>, vector<2x4x64xf32>,
      %126 = math.tanh %124 : vector<2x4x64xf32>
      %127 = arith.mulf %120, %126 : vector<2x4x64xf32>
      %c0_71 = arith.constant 0 : index
      %c1_72 = arith.constant 1 : index
      %c32 = arith.constant 32 : index
      %128 = vector.load %arg18[%c0_71, %c1_72, %c32] : memref<2x6x96xf32, #tpu.memory_space<vmem>>, vector<2x4x64xf32>
      tpu.vector_store %arg18[%c0_71, %c1_72, %c32], %127 {strides = array<i32>} : memref<2x6x96xf32, #tpu.memory_space<vmem>>, vector<2x4x64xf32>,
      %129 = vector.shape_cast %127 : vector<2x4x64xf32> to vector<2x2x2x64xf32>
      %cst_73 = arith.constant dense<0xFF800000> : vector<2x2x64xf32>
      %130 = vector.multi_reduction <maximumf>, %129, %cst_73 [2] : vector<2x2x2x64xf32> to vector<2x2x64xf32>
      %cst_74 = arith.constant 5.000000e-02 : f32
      %131 = vector.broadcast %cst_74 : f32 to vector<2x2x64xf32>
      %132 = arith.cmpf ogt, %130, %131 : vector<2x2x64xf32>
      %133 = arith.extui %132 : vector<2x2x64xi1> to vector<2x2x64xi32>
      %134 = arith.sitofp %133 : vector<2x2x64xi32> to vector<2x2x64xf32>
      %135 = vector.shape_cast %134 : vector<2x2x64xf32> to vector<2x128xf32>
      %136 = arith.truncf %135 : vector<2x128xf32> to vector<2x128xbf16>
      %c0_75 = arith.constant 0 : index
      %c0_76 = arith.constant 0 : index
      %137 = vector.load %arg8[%c0_75, %c0_76] : memref<128x512xbf16, #tpu.memory_space<vmem>>, vector<128x512xbf16>
      %cst_77 = arith.constant dense<0.000000e+00> : vector<2x512xf32>
      %138 = tpu.matmul %136, %137, %cst_77 {dimension_numbers = #tpu.dot_dimension_numbers<[1], [0], [0], [1], [0, 0, 1, 1], [], []>} : vector<2x128xbf16>, vector<128x512xbf16>, vector<2x512xf32> -> vector<2x512xf32>
      %139 = arith.addf %138, %14 : vector<2x512xf32>
      %c0_78 = arith.constant 0 : index
      %c0_79 = arith.constant 0 : index
      %140 = vector.load %arg20[%c0_78, %c0_79] : memref<2x512xf32, #tpu.memory_space<vmem>>, vector<2x512xf32>
      %cst_80 = arith.constant 5.000000e-02 : f32
      %141 = vector.broadcast %cst_80 : f32 to vector<2x512xf32>
      %142 = arith.cmpf ogt, %140, %141 : vector<2x512xf32>
      %143 = arith.extui %142 : vector<2x512xi1> to vector<2x512xi32>
      %144 = arith.sitofp %143 : vector<2x512xi32> to vector<2x512xf32>
      %cst_81 = arith.constant 0.918180525 : f32
      %145 = vector.broadcast %cst_81 : f32 to vector<2x512xf32>
      %146 = arith.mulf %145, %140 : vector<2x512xf32>
      %147 = arith.addf %146, %139 : vector<2x512xf32>
      %cst_82 = arith.constant 5.000000e-02 : f32
      %148 = vector.broadcast %cst_82 : f32 to vector<2x512xf32>
      %149 = arith.mulf %144, %148 : vector<2x512xf32>
      %150 = arith.subf %147, %149 : vector<2x512xf32>
      %c0_83 = arith.constant 0 : index
      %c0_84 = arith.constant 0 : index
      %151 = vector.load %arg20[%c0_83, %c0_84] : memref<2x512xf32, #tpu.memory_space<vmem>>, vector<2x512xf32>
      tpu.vector_store %arg20[%c0_83, %c0_84], %150 {strides = array<i32>} : memref<2x512xf32, #tpu.memory_space<vmem>>, vector<2x512xf32>,
      %cst_85 = arith.constant 5.000000e-02 : f32
      %152 = vector.broadcast %cst_85 : f32 to vector<2x512xf32>
      %153 = arith.cmpf ogt, %150, %152 : vector<2x512xf32>
      %154 = arith.extui %153 : vector<2x512xi1> to vector<2x512xi32>
      %155 = arith.sitofp %154 : vector<2x512xi32> to vector<2x512xf32>
      %156 = arith.truncf %155 : vector<2x512xf32> to vector<2x512xbf16>
      %c0_86 = arith.constant 0 : index
      %c0_87 = arith.constant 0 : index
      %157 = vector.load %arg10[%c0_86, %c0_87] : memref<512x128xbf16, #tpu.memory_space<vmem>>, vector<512x128xbf16>
      %cst_88 = arith.constant dense<0.000000e+00> : vector<2x128xf32>
      %158 = tpu.matmul %156, %157, %cst_88 {dimension_numbers = #tpu.dot_dimension_numbers<[1], [0], [0], [1], [0, 0, 1, 1], [], []>} : vector<2x512xbf16>, vector<512x128xbf16>, vector<2x128xf32> -> vector<2x128xf32>
      %159 = arith.addf %158, %17 : vector<2x128xf32>
      %c0_89 = arith.constant 0 : index
      %c0_90 = arith.constant 0 : index
      %160 = vector.load %arg21[%c0_89, %c0_90] : memref<2x128xf32, #tpu.memory_space<vmem>>, vector<2x128xf32>
      %cst_91 = arith.constant 5.000000e-02 : f32
      %161 = vector.broadcast %cst_91 : f32 to vector<2x128xf32>
      %162 = arith.cmpf ogt, %160, %161 : vector<2x128xf32>
      %163 = arith.extui %162 : vector<2x128xi1> to vector<2x128xi32>
      %164 = arith.sitofp %163 : vector<2x128xi32> to vector<2x128xf32>
      %cst_92 = arith.constant 0.918180525 : f32
      %165 = vector.broadcast %cst_92 : f32 to vector<2x128xf32>
      %166 = arith.mulf %165, %160 : vector<2x128xf32>
      %167 = arith.addf %166, %159 : vector<2x128xf32>
      %cst_93 = arith.constant 5.000000e-02 : f32
      %168 = vector.broadcast %cst_93 : f32 to vector<2x128xf32>
      %169 = arith.mulf %164, %168 : vector<2x128xf32>
      %170 = arith.subf %167, %169 : vector<2x128xf32>
      %c0_94 = arith.constant 0 : index
      %c0_95 = arith.constant 0 : index
      %171 = vector.load %arg21[%c0_94, %c0_95] : memref<2x128xf32, #tpu.memory_space<vmem>>, vector<2x128xf32>
      tpu.vector_store %arg21[%c0_94, %c0_95], %170 {strides = array<i32>} : memref<2x128xf32, #tpu.memory_space<vmem>>, vector<2x128xf32>,
      %cst_96 = arith.constant 5.000000e-02 : f32
      %172 = vector.broadcast %cst_96 : f32 to vector<2x128xf32>
      %173 = arith.cmpf ogt, %170, %172 : vector<2x128xf32>
      %174 = arith.extui %173 : vector<2x128xi1> to vector<2x128xi32>
      %175 = arith.sitofp %174 : vector<2x128xi32> to vector<2x128xf32>
      %176 = arith.index_cast %20 : i32 to index
      %c0_97 = arith.constant 0 : index
      %c0_98 = arith.constant 0 : index
      %177 = vector.load %arg12[%176, %c0_97, %c0_98] : memref<8x2x128xf32, #tpu.memory_space<vmem>>, vector<1x2x128xf32>
      %178 = vector.shape_cast %177 : vector<1x2x128xf32> to vector<2x128xf32>
      %179 = vector.shape_cast %175 : vector<2x128xf32> to vector<1x2x128xf32>
      tpu.vector_store %arg12[%176, %c0_97, %c0_98], %179 {strides = array<i32>} : memref<8x2x128xf32, #tpu.memory_space<vmem>>, vector<1x2x128xf32>,
      %180 = arith.index_cast %20 : i32 to index
      %c0_99 = arith.constant 0 : index
      %c0_100 = arith.constant 0 : index
      %181 = vector.load %arg13[%180, %c0_99, %c0_100] : memref<8x2x128xf32, #tpu.memory_space<vmem>>, vector<1x2x128xf32>
      %182 = vector.shape_cast %181 : vector<1x2x128xf32> to vector<2x128xf32>
      %183 = vector.shape_cast %170 : vector<2x128xf32> to vector<1x2x128xf32>
      tpu.vector_store %arg13[%180, %c0_99, %c0_100], %183 {strides = array<i32>} : memref<8x2x128xf32, #tpu.memory_space<vmem>>, vector<1x2x128xf32>,
    }
    %c8_i32_11 = arith.constant 8 : i32
    return
  }
  func.func @transform_0(%arg0: i32) -> (i32, i32, i32, i32) {
    %c0_i32 = arith.constant 0 : i32
    %c0_i32_0 = arith.constant 0 : i32
    %c0_i32_1 = arith.constant 0 : i32
    %c0_i32_2 = arith.constant 0 : i32
    return %arg0, %c0_i32, %c0_i32_0, %c0_i32_1 : i32, i32, i32, i32
  }
  func.func @transform_1(%arg0: i32) -> (i32, i32) {
    %c0_i32 = arith.constant 0 : i32
    %c0_i32_0 = arith.constant 0 : i32
    %c0_i32_1 = arith.constant 0 : i32
    return %c0_i32, %c0_i32_0 : i32, i32
  }
  func.func @transform_2(%arg0: i32) -> (i32, i32) {
    %c0_i32 = arith.constant 0 : i32
    %c0_i32_0 = arith.constant 0 : i32
    %c0_i32_1 = arith.constant 0 : i32
    return %c0_i32, %c0_i32_0 : i32, i32
  }
  func.func @transform_3(%arg0: i32) -> (i32, i32) {
    %c0_i32 = arith.constant 0 : i32
    %c0_i32_0 = arith.constant 0 : i32
    %c0_i32_1 = arith.constant 0 : i32
    return %c0_i32, %c0_i32_0 : i32, i32
  }
  func.func @transform_4(%arg0: i32) -> (i32, i32) {
    %c0_i32 = arith.constant 0 : i32
    %c0_i32_0 = arith.constant 0 : i32
    %c0_i32_1 = arith.constant 0 : i32
    return %c0_i32, %c0_i32_0 : i32, i32
  }
  func.func @transform_5(%arg0: i32) -> (i32, i32) {
    %c0_i32 = arith.constant 0 : i32
    %c0_i32_0 = arith.constant 0 : i32
    %c0_i32_1 = arith.constant 0 : i32
    return %c0_i32, %c0_i32_0 : i32, i32
  }
  func.func @transform_6(%arg0: i32) -> (i32, i32) {
    %c0_i32 = arith.constant 0 : i32
    %c0_i32_0 = arith.constant 0 : i32
    %c0_i32_1 = arith.constant 0 : i32
    return %c0_i32, %c0_i32_0 : i32, i32
  }
  func.func @transform_7(%arg0: i32) -> (i32, i32) {
    %c0_i32 = arith.constant 0 : i32
    %c0_i32_0 = arith.constant 0 : i32
    %c0_i32_1 = arith.constant 0 : i32
    return %c0_i32, %c0_i32_0 : i32, i32
  }
  func.func @transform_8(%arg0: i32) -> (i32, i32) {
    %c0_i32 = arith.constant 0 : i32
    %c0_i32_0 = arith.constant 0 : i32
    %c0_i32_1 = arith.constant 0 : i32
    return %c0_i32, %c0_i32_0 : i32, i32
  }
  func.func @transform_9(%arg0: i32) -> (i32, i32) {
    %c0_i32 = arith.constant 0 : i32
    %c0_i32_0 = arith.constant 0 : i32
    %c0_i32_1 = arith.constant 0 : i32
    return %c0_i32, %c0_i32_0 : i32, i32
  }
  func.func @transform_10(%arg0: i32) -> (i32, i32) {
    %c0_i32 = arith.constant 0 : i32
    %c0_i32_0 = arith.constant 0 : i32
    %c0_i32_1 = arith.constant 0 : i32
    return %c0_i32, %c0_i32_0 : i32, i32
  }
  func.func @transform_11(%arg0: i32) -> (i32, i32, i32) {
    %c0_i32 = arith.constant 0 : i32
    %c0_i32_0 = arith.constant 0 : i32
    %c0_i32_1 = arith.constant 0 : i32
    return %arg0, %c0_i32, %c0_i32_0 : i32, i32, i32
  }
  func.func @transform_12(%arg0: i32) -> (i32, i32, i32) {
    %c0_i32 = arith.constant 0 : i32
    %c0_i32_0 = arith.constant 0 : i32
    %c0_i32_1 = arith.constant 0 : i32
    return %arg0, %c0_i32, %c0_i32_0 : i32, i32, i32
  }
}

</mosaic_0001>

<bundles_post_ra>
// kernel: tpu_custom_call.1
= control target key start
LH: loop header
LB: loop body
LE: loop exit
PB: predicated region body
PF: predicated region fallthrough
CT: control target
= control target key end

     0   :  { %18 = vsyncpa [#allocation11], 0  ;;  %s3749_s0 = inlined_call_operand.vmem [shape: f32[8,2,16,4], index: 0, kind: input, shape index: {}]   ;;  %s3750_s1 = inlined_call_operand.vmem [shape: bf16[60,64], index: 1, kind: input, shape index: {}]   ;;  %s3751_s2 = inlined_call_operand.vmem [shape: f32[1,64], index: 2, kind: input, shape index: {}]   ;;  %s3752_s3 = inlined_call_operand.hbm [shape: bf16[144,128], index: 3, kind: input, shape index: {}]   ;;  %s3753_s4 = inlined_call_operand.vmem [shape: f32[1,128], index: 4, kind: input, shape index: {}]   ;;  %s3754_s5 = inlined_call_operand.vmem [shape: bf16[288,256], index: 5, kind: input, shape index: {}]   ;;  %s3755_s6 = inlined_call_operand.vmem [shape: f32[1,256], index: 6, kind: input, shape index: {}]   ;;  %s3756_s7 = inlined_call_operand.hbm [shape: bf16[128,512], index: 7, kind: input, shape index: {}]   ;;  %s3757_s8 = inlined_call_operand.vmem [shape: f32[1,512], index: 8, kind: input, shape index: {}]   ;;  %s3758_s9 = inlined_call_operand.hbm [shape: bf16[512,128], index: 9, kind: input, shape index: {}]   ;;  %s3759_s10 = inlined_call_operand.vmem [shape: f32[1,128], index: 10, kind: input, shape index: {}]   ;;  %s3760_s11 = inlined_call_operand.hbm [shape: f32[8,2,128], index: 11, kind: output, shape index: {0}]   ;;  %s3761_s12 = inlined_call_operand.hbm [shape: f32[8,2,128], index: 12, kind: output, shape index: {1}]  }
   0x1   :  { %19 = vsyncpa [#allocation14], 0 }
   0x2   :  { %20 = vsyncpa [#allocation12], 0 }
   0x3   :  { %21 = vsyncpa [#allocation18], 0  ;;  %s3073_s21 = smov [#allocation13]   ;;  %s2947_s25 = scalar_lea.hbm %s3756_s7, 4096 }
   0x4   :  { %s51_s22 = sshll.u32 %s3073_s21, 4  ;;  %p2948_p0 = scmp.ne.s32.totalorder %s3756_s7, %s2947_s25  ;;  %s52_s22 = int_to_ptr.vmem [resolvable:$true] %s51_s22 }
   0x5   :  { %p2951_p1 = scmp.lt.u32.totalorder %s2947_s25, %s3756_s7 }
   0x7   :  { %p2953_p2 = pnand %p2951_p1, %p2948_p0 }
   0x9   :  { %2956 = shalt.err (!%p2953_p2)
}
   0xa   :  { %s2957_s30 = scalar_lea.vmem %s52_s22, 4096  ;;  %p2962_p4 = scmp.lt.s32.totalorder %s52_s22, %s52_s22 }
   0xb   :  { %p2958_p3 = scmp.ne.s32.totalorder %s52_s22, %s2957_s30  ;;  %p2963_p5 = scmp.lt.s32.totalorder %s2957_s30, %s2957_s30 }
   0xd   :  { %p2964_p6 = por %p2963_p5, %p2962_p4 }
   0xf   :  { %p2965_p7 = pnand %p2964_p6, %p2958_p3 }
  0x11   :  { %2968 = shalt.err (!%p2965_p7)
}
  0x12   :  { %s3074_s13 = smov 256   ;;  %s3075_s14 = smov 16  }
  0x13   :  { %57 = dma.hbm_to_vmem [thread:$0]  %s3756_s7, 4096, %s52_s22, [#allocation14], %s3074_s13, %s3074_s13, %s3075_s14  }
  0x14   :  { %s3076_s17 = smov [#allocation10]   ;;  %s2969_s21 = scalar_lea.hbm %s3752_s3, 1152 }
  0x15   :  { %s33_s18 = sshll.u32 %s3076_s17, 4  ;;  %p2970_p8 = scmp.ne.s32.totalorder %s3752_s3, %s2969_s21  ;;  %s34_s18 = int_to_ptr.vmem [resolvable:$true] %s33_s18 }
  0x16   :  { %p2973_p9 = scmp.lt.u32.totalorder %s2969_s21, %s3752_s3 }
  0x18   :  { %p2975_p10 = pnand %p2973_p9, %p2970_p8 }
  0x1a   :  { %2978 = shalt.err (!%p2975_p10)
}
  0x1b   :  { %s2979_s27 = scalar_lea.vmem %s34_s18, 1152  ;;  %p2984_p12 = scmp.lt.s32.totalorder %s34_s18, %s34_s18 }
  0x1c   :  { %p2980_p11 = scmp.ne.s32.totalorder %s34_s18, %s2979_s27  ;;  %p2985_p13 = scmp.lt.s32.totalorder %s2979_s27, %s2979_s27 }
  0x1e   :  { %p2986_p0 = por %p2985_p13, %p2984_p12 }
  0x20   :  { %p2987_p1 = pnand %p2986_p0, %p2980_p11 }
  0x22   :  { %2990 = shalt.err (!%p2987_p1)
}
  0x23   :  { %s3077_s7 = smov 64   ;;  %s3078_s22 = smov 4  }
  0x24   :  { %39 = dma.hbm_to_vmem [thread:$0]  %s3752_s3, 1152, %s34_s18, [#allocation11], %s3077_s7, %s3077_s7, %s3078_s22  }
  0x25   :  { %s3079_s30 = smov [#allocation15]   ;;  %s2991_s16 = scalar_lea.hbm %s3758_s9, 4096 }
  0x26   :  { %s65_s13 = sshll.u32 %s3079_s30, 4  ;;  %p2992_p2 = scmp.ne.s32.totalorder %s3758_s9, %s2991_s16  ;;  %s66_s13 = int_to_ptr.vmem [resolvable:$true] %s65_s13 }
  0x27   :  { %p2995_p3 = scmp.lt.u32.totalorder %s2991_s16, %s3758_s9 }
  0x29   :  { %p2997_p4 = pnand %p2995_p3, %p2992_p2 }
  0x2b   :  { %3000 = shalt.err (!%p2997_p4)
}
  0x2c   :  { %s3001_s23 = scalar_lea.vmem %s66_s13, 4096  ;;  %p3006_p6 = scmp.lt.s32.totalorder %s66_s13, %s66_s13 }
  0x2d   :  { %p3002_p5 = scmp.ne.s32.totalorder %s66_s13, %s3001_s23  ;;  %p3007_p7 = scmp.lt.s32.totalorder %s3001_s23, %s3001_s23 }
  0x2f   :  { %p3008_p8 = por %p3007_p7, %p3006_p6 }
  0x31   :  { %p3009_p9 = pnand %p3008_p8, %p3002_p5 }
  0x33   :  { %3012 = shalt.err (!%p3009_p9)
}
  0x34   :  { %71 = dma.hbm_to_vmem [thread:$0]  %s3758_s9, 4096, %s66_s13, [#allocation14], %s3077_s7, %s3077_s7, %s3078_s22  }
  0x35   :  { %3061 = dma.done.wait [#allocation11], 1152  }
  0x36   :  { %3062 = vsyncadd [#allocation11], 4294966144 }
  0x37   :  { %3063 = dma.done.wait [#allocation14], 8192  }
  0x38   :  { %3064 = vsyncadd [#allocation14], 4294959104  ;;  %v134_v0 = vlaneseq  ;;  %vm3762_vm0 = vcmask 162816   ;;  %vm91_vm1 = vcmask 156672   ;;  %v3080_v1 = vmov 0.0  }
  0x39   :  { %89 = vst.msk [vmem:[#allocation2] sm:$0xff] %vm3762_vm0, %v3080_v1  ;;  %90 = vst.msk [vmem:[#allocation2 + $0x8] sm:$0xff] %vm3762_vm0, %v3080_v1  ;;  %vm96_vm2 = vcmask 130048   ;;  %vm3767_vm3 = vcmask 392192   ;;  %vm103_vm4 = vcmask 386048   ;;  %vm3764_vm5 = vcmask 261120  }
  0x3a   :  { %93 = vst.msk [vmem:[#allocation2 + $0x18] sm:$0xff] %vm3762_vm0, %v3080_v1  ;;  %94 = vst.msk [vmem:[#allocation2 + $0x20] sm:$0xff] %vm3762_vm0, %v3080_v1  ;;  %v3204_v2 = vshrl.u32 %v134_v0, 7  ;;  %vm110_vm6 = vcmask 783360   ;;  %vm3763_vm7 = vcmask 519168  }
  0x3b   :  { %116 = vst [vmem:[#allocation8] sm:$0xff] %v3080_v1  ;;  %117 = vst [vmem:[#allocation9] sm:$0x3] %v3080_v1  ;;  %v3223_v7 = vld [vmem:[%s3751_s2] ss:$0 sm:$0xff] }
  0x3c   :  { %92 = vst.msk [vmem:[#allocation2 + $0x10] sm:$0x3] %vm91_vm1, %v3080_v1  ;;  %95 = vst.msk [vmem:[#allocation2 + $0x28] sm:$0x3] %vm91_vm1, %v3080_v1  ;;  %v136_v3 = vsub.s32 0, %v3204_v2  ;;  %v140_v4 = vsub.s32 1, %v3204_v2 }
  0x3d   :  { %97 = vst.msk [vmem:[#allocation3] sm:$0xff] %vm96_vm2, %v3080_v1  ;;  %98 = vst.msk [vmem:[#allocation3 + $0x8] sm:$0xff] %vm96_vm2, %v3080_v1  ;;  %v156_v5 = vsub.s32 2, %v3204_v2  ;;  %v160_v6 = vsub.s32 3, %v3204_v2  ;;  %v3228_v8 = vld [vmem:[%s3753_s4] ss:$0 sm:$0xff] }
  0x3e   :  { %99 = vst.msk [vmem:[#allocation3 + $0x10] sm:$0xff] %vm96_vm2, %v3080_v1  ;;  %100 = vst.msk [vmem:[#allocation3 + $0x18] sm:$0xff] %vm96_vm2, %v3080_v1  ;;  %v132_v9 = vld [vmem:[%s3755_s6] sm:$0x3]  ;;  %s3253_s4 = smov 0  }
  0x3f   :  { %102 = vst.msk [vmem:[#allocation4] sm:$0xff] %vm3767_vm3, %v3080_v1  ;;  %105 = vst.msk [vmem:[#allocation4 + $0x10] sm:$0xff] %vm3767_vm3, %v3080_v1  ;;  %v3233_v10 = vrot.slane %v132_v9, %v136_v3  ;;  %v3235_v11 = vrot.slane %v132_v9, %v140_v4  ;;  %v144_v12 = vld [vmem:[%s3757_s8] sm:$0xf] }
  0x40   :  { %104 = vst.msk [vmem:[#allocation4 + $0x8] sm:$0x3] %vm103_vm4, %v3080_v1  ;;  %106 = vst.msk [vmem:[#allocation4 + $0x18] sm:$0x3] %vm103_vm4, %v3080_v1  ;;  %v3243_v13 = vld [vmem:[%s3759_s10] ss:$0 sm:$0xff]  ;;  %v3245_v14 = vrot.slane %v144_v12, %v136_v3  ;;  %v3247_v15 = vrot.slane %v144_v12, %v140_v4  ;;  %v3249_v16 = vrot.slane %v144_v12, %v156_v5 }
  0x41   :  { %108 = vst.msk [vmem:[#allocation5] sm:$0xff] %vm3764_vm5, %v3080_v1  ;;  %109 = vst.msk [vmem:[#allocation5 + $0x8] sm:$0xff] %vm3764_vm5, %v3080_v1  ;;  %v3251_v17 = vrot.slane %v144_v12, %v160_v6 }
  0x42   :  { %111 = vst.msk [vmem:[#allocation6] sm:$0x3f] %vm110_vm6, %v3080_v1  ;;  %112 = vst.msk [vmem:[#allocation6 + $0x8] sm:$0x3f] %vm110_vm6, %v3080_v1 }
  0x43   :  { %114 = vst.msk [vmem:[#allocation7] sm:$0xf] %vm3763_vm7, %v3080_v1  ;;  %115 = vst.msk [vmem:[#allocation7 + $0x4] sm:$0xf] %vm3763_vm7, %v3080_v1 }
  0x44 LB: > { %vm185_vm8 = vcmask 31744   ;;  %v2736_v18 = vld [vmem:[%s3750_s1] sm:$0xff]   ;;  %s2432_s10 = sshll.u32 %s3071_s4, 5  ;;  %v2737_v19 = vld [vmem:[%s3750_s1 + $0x8] sm:$0xff]   ;;  %v2738_v24 = vld [vmem:[%s3750_s1 + $0x10] sm:$0xff]   ;;  %vm3768_vm9 = vcmask 1046528   ;;  %s3071_s4 = sphi %s3253_s4, %s178_s4  }
  0x45   : > { %s180_s16 = scalar_lea.vmem %s3749_s0, %s2432_s10  ;;  %2643 = vmatprep.subr.bf16.mxu0 %v2736_v18  ;;  %v2739_v25 = vld [vmem:[%s3750_s1 + $0x18] sm:$0x3f]   ;;  %vm225_vm10 = vcmask 1045504   ;;  %s3081_s23 = smov 20   ;;  %vm253_vm11 = vcmask 326656   ;;  %vm3769_vm0 = vcmask 162816  }
  0x46   : > { %v181_v20 = vld [vmem:[%s180_s16] sm:$0xff]  ;;  %v182_v21 = vld [vmem:[%s180_s16 + $0x8] sm:$0xff]  ;;  %v183_v22 = vld [vmem:[%s180_s16 + $0x10] sm:$0xff]  ;;  %2644 = vmatpush3.bf16.msra.mxu0 %v2736_v18  ;;  %v299_v29 = vsel %vm225_vm10, %v2739_v25, 0  ;;  %s3082_s3 = smov 40   ;;  %vm291_vm12 = vcmask 490496  }
  0x47   : > { %186 = vst.msk [vmem:[#allocation2 + $0x1] sm:$0xff] %vm185_vm8, %v181_v20  ;;  %187 = vst.msk [vmem:[#allocation2 + $0x9] sm:$0xff] %vm185_vm8, %v182_v21  ;;  %v184_v23 = vld [vmem:[%s180_s16 + $0x18] sm:$0xff]  ;;  %2645 = vmatprep.subr.bf16.mxu0 %v2737_v19  ;;  %s3083_s18 = smov 80   ;;  %s3084_s9 = smov 16   ;;  %vm592_vm13 = vcmask 386304  }
  0x48   : > { %188 = vst.msk [vmem:[#allocation2 + $0x19] sm:$0xff] %vm185_vm8, %v183_v22  ;;  %189 = vst.msk [vmem:[#allocation2 + $0x21] sm:$0xff] %vm185_vm8, %v184_v23  ;;  %vm3765_vm15 = vcmask 1041409   ;;  %vm3766_vm4 = vcmask 1042434   ;;  %s3087_s24 = smov 96   ;;  %s3089_s25 = smov 48  }
  0x49   : > { %s3090_s26 = smov 32   ;;  %s3091_s27 = smov 64  }
  0x4a   : > { %2646 = vmatpush3.bf16.msra.mxu0 %v2737_v19  ;;  %s3092_s13 = smov 112   ;;  %s3093_s14 = smov 100  }
  0x4b   : > { %2647 = vmatprep.subr.bf16.mxu0 %v2738_v24 }
  0x4e   : > { %v190_v26 = vld [vmem:[#allocation2] sm:$0xff]  ;;  %v191_v27 = vld [vmem:[#allocation2 + $0x8] sm:$0xff]  ;;  %v192_v28 = vld [vmem:[#allocation2 + $0x10] sm:$0x3]  ;;  %2648 = vmatpush3.bf16.msra.mxu0 %v2738_v24 }
  0x4f   : > { %v203_v30 = vrot.slane %v190_v26, 1  ;;  %v204_v31 = vrot.slane %v191_v27, 1  ;;  %v206_v32 = vrot.slane %v192_v28, 1  ;;  %v226_v33 = vrot.slane %v190_v26, 2  ;;  %v193_v34 = vld [vmem:[#allocation2 + $0x18] sm:$0xff]  ;;  %v194_v35 = vld [vmem:[#allocation2 + $0x20] sm:$0xff]  ;;  %2661 = vmatprep.subr.msk.bf16.mxu0 %vm225_vm10, %v2739_v25 }
  0x50   : > { %v227_v36 = vrot.slane %v191_v27, 2  ;;  %v229_v37 = vrot.slane %v192_v28, 2  ;;  %v195_v38 = vld [vmem:[#allocation2 + $0x28] sm:$0x3]  ;;  %v208_v39 = vrot.slane %v193_v34, 1  ;;  %v209_v40 = vrot.slane %v194_v35, 1 }
  0x51   : > { %v205_v41 = vsel %vm3768_vm9, %v203_v30, %v204_v31  ;;  %v207_v42 = vsel %vm3768_vm9, %v204_v31, %v206_v32  ;;  %v211_v43 = vrot.slane %v195_v38, 1  ;;  %v231_v44 = vrot.slane %v193_v34, 2 }
  0x52   : > { %v2696_v45 = vpack.i.bf16 %v207_v42, %v205_v41  ;;  %v228_v46 = vsel %vm225_vm10, %v226_v33, %v227_v36  ;;  %v230_v47 = vsel %vm225_vm10, %v227_v36, %v229_v37  ;;  %v210_v48 = vsel %vm3768_vm9, %v208_v39, %v209_v40  ;;  %2650 = vmatpush3.bf16.msra.mxu0 %v299_v29  ;;  %v380_v37 = vld [vmem:[#allocation3 + $0x10] sm:$0xff]  ;;  %v381_v39 = vld [vmem:[#allocation3 + $0x18] sm:$0xff] }
  0x53   : > { %v2706_v49 = vpack.i.bf16 %v230_v47, %v228_v46  ;;  %v212_v50 = vsel %vm3768_vm9, %v209_v40, %v211_v43  ;;  %v232_v51 = vrot.slane %v194_v35, 2  ;;  %v234_v52 = vrot.slane %v195_v38, 2  ;;  %v378_v38 = vld [vmem:[#allocation3] sm:$0xff]  ;;  %v379_v40 = vld [vmem:[#allocation3 + $0x8] sm:$0xff] }
  0x54   : > { %2697 = vrot.lane.b32.xlu0 %v2696_v45, %s3081_s23  ;;  %v2701_v53 = vpack.i.bf16 %v212_v50, %v210_v48 }
  0x55   : > { %2707 = vrot.lane.b32.xlu1 %v2706_v49, %s3082_s3  ;;  %v233_v54 = vsel %vm225_vm10, %v231_v44, %v232_v51  ;;  %v235_v55 = vsel %vm225_vm10, %v232_v51, %v234_v52 }
  0x56   : > { %v2711_v56 = vpack.i.bf16 %v235_v55, %v233_v54 }
  0x58   : > { %2702 = vrot.lane.b32.xlu0 %v2701_v53, %s3081_s23 }
  0x59   : > { %2712 = vrot.lane.b32.xlu1 %v2711_v56, %s3082_s3 }
  0xc6   : > { %v2698_v57 = vpop.permute.xlu0 %2697 }
  0xc7   : > { %v2700_v58 = vunpack.i.h.bf16 %v2698_v57  ;;  %v2699_v59 = vunpack.i.l.bf16 %v2698_v57  ;;  %v2708_v60 = vpop.permute.xlu1 %2707 }
  0xc8   : > { %v2710_v61 = vunpack.i.h.bf16 %v2708_v60  ;;  %v2709_v62 = vunpack.i.l.bf16 %v2708_v60 }
  0xc9   : > { %v250_v63 = vsel %vm3769_vm0, %v191_v27, %v2700_v58  ;;  %v249_v0 = vsel %vm3769_vm0, %v190_v26, %v2699_v59 }
  0xca   : > { %v2703_v1 = vpop.permute.xlu0 %2702  ;;  %v254_v3 = vsel %vm253_vm11, %v249_v0, %v2709_v62  ;;  %v255_v4 = vsel %vm253_vm11, %v250_v63, %v2710_v61 }
  0xcb   : > { %v2705_v5 = vunpack.i.h.bf16 %v2703_v1  ;;  %v2704_v6 = vunpack.i.l.bf16 %v2703_v1  ;;  %v2713_v9 = vpop.permute.xlu1 %2712  ;;  %v258_v12 = vpack.c.bf16 %v255_v4, %v254_v3 }
  0xcc   : > { %v2715_v18 = vunpack.i.h.bf16 %v2713_v9  ;;  %v2714_v19 = vunpack.i.l.bf16 %v2713_v9 }
  0xcd   : > { %v252_v20 = vsel %vm3769_vm0, %v194_v35, %v2705_v5  ;;  %v251_v21 = vsel %vm3769_vm0, %v193_v34, %v2704_v6  ;;  %2651 = vmatprep.mubr.msk.bf16.mxu0 %vm291_vm12, %v258_v12 }
  0xce   : > { %v256_v22 = vsel %vm253_vm11, %v251_v21, %v2714_v19  ;;  %v257_v23 = vsel %vm253_vm11, %v252_v20, %v2715_v18 }
  0xcf   : > { %v259_v24 = vpack.c.bf16 %v257_v23, %v256_v22 }
  0xd1   : > { %2652 = vmatmul.mubr.msk.bf16.vlgmr.msra.gmra.mrb[0].mxu0 %vm291_vm12, %v259_v24 }
 0x1a4   : > { %v2653_v25 = vpop.f32.mrb[0].mxu0 }
 0x1a5   : > { %v344_v26 = vadd.f32 %v2653_v25, %v3223_v7  ;;  %v335_v27 = vpop.f32.mrb[1].mxu0 }
 0x1a6   : > { %v336_v28 = vadd.f32 %v3223_v7, %v335_v27  ;;  %v2654_v29 = vpop.f32.mrb[2].mxu0 }
 0x1a7   : > { %2883 = vtanh.f32 %v344_v26  ;;  %v338_v30 = vpop.f32.mrb[3].mxu0  ;;  %v347_v31 = vadd.f32 %v2654_v29, %v3223_v7  ;;  %v2441_v41 = vmul.f32 -1.442695, %v344_v26 }
 0x1a8   : > { %2885 = vtanh.f32 %v336_v28  ;;  %v339_v32 = vadd.f32 %v3223_v7, %v338_v30  ;;  %v2439_v42 = vmul.f32 -1.442695, %v336_v28 }
 0x1a9   : > { %2887 = vtanh.f32 %v347_v31  ;;  %v2442_v43 = vmul.f32 -1.442695, %v347_v31  ;;  %v3085_v31 = vmov 1983009808  }
 0x1aa   : > { %2889 = vtanh.f32 %v339_v32  ;;  %v2440_v44 = vmul.f32 -1.442695, %v339_v32  ;;  %v510_v32 = vunpack.c.l.s4 %v3085_v31 }
 0x1ab   : > { %2891 = vpow2.f32 %v2441_v41 }
 0x1ac   : > { %2893 = vpow2.f32 %v2439_v42 }
 0x1ad   : > { %2895 = vpow2.f32 %v2442_v43 }
 0x1ae   : > { %2897 = vpow2.f32 %v2440_v44 }
 0x1b1   : > { %v2884_v33 = vpop.eup %2883 }
 0x1b2   : > { %v2886_v34 = vpop.eup %2885  ;;  %410 = vrot.lane.b32.xlu1 %v2884_v33, %s3083_s18  ;;  %v511_v33 = vunpack.c.0.s8 %v510_v32 }
 0x1b3   : > { %406 = vrot.lane.b32.xlu0 %v2886_v34, %s3083_s18  ;;  %v2888_v35 = vpop.eup %2887 }
 0x1b4   : > { %v2890_v36 = vpop.eup %2889  ;;  %v3337_v34 = vsub.s32 %v511_v33, %v3204_v2 }
 0x1b5   : > { %v2892_v45 = vpop.eup %2891 }
 0x1b6   : > { %412 = vrot.lane.b32.xlu1 %v2888_v35, %s3083_s18  ;;  %v2894_v46 = vpop.eup %2893  ;;  %v364_v47 = vadd.f32 1.0, %v2892_v45 }
 0x1b7   : > { %408 = vrot.lane.b32.xlu0 %v2890_v36, %s3083_s18  ;;  %v362_v48 = vadd.f32 1.0, %v2894_v46  ;;  %v2896_v49 = vpop.eup %2895 }
 0x1b8   : > { %v2898_v50 = vpop.eup %2897  ;;  %2899 = vrcp.f32 %v364_v47  ;;  %v365_v51 = vadd.f32 1.0, %v2896_v49 }
 0x1b9   : > { %2901 = vrcp.f32 %v362_v48  ;;  %v363_v52 = vadd.f32 1.0, %v2898_v50 }
 0x1ba   : > { %390 = vrot.lane.b32.xlu1 %v380_v37, %s3084_s9  ;;  %2903 = vrcp.f32 %v365_v51 }
 0x1bb   : > { %386 = vrot.lane.b32.xlu0 %v378_v38, %s3084_s9  ;;  %2905 = vrcp.f32 %v363_v52 }
 0x1be   : > { %392 = vrot.lane.b32.xlu1 %v381_v39, %s3084_s9 }
 0x1bf   : > { %388 = vrot.lane.b32.xlu0 %v379_v40, %s3084_s9 }
 0x1c2   : > { %v2900_v53 = vpop.eup %2899 }
 0x1c3   : > { %v2902_v55 = vpop.eup %2901 }
 0x1c4   : > { %v3310_v59 = vpop.eup %2903 }
 0x1c5   : > { %v3313_v62 = vpop.eup %2905 }
 0x224   : > { %v411_v54 = vpop.permute.xlu1 %410 }
 0x225   : > { %v420_v56 = vmul.f32 %v2900_v53, %v411_v54  ;;  %v407_v57 = vpop.permute.xlu0 %406 }
 0x226   : > { %v418_v58 = vmul.f32 %v2902_v55, %v407_v57 }
 0x227   : > { %430 = vrot.lane.b32.xlu1 %v420_v56, %s3084_s9 }
 0x228   : > { %426 = vrot.lane.b32.xlu0 %v418_v58, %s3084_s9  ;;  %v413_v60 = vpop.permute.xlu1 %412 }
 0x229   : > { %v421_v61 = vmul.f32 %v3310_v59, %v413_v60  ;;  %v409_v63 = vpop.permute.xlu0 %408 }
 0x22a   : > { %v419_v0 = vmul.f32 %v3313_v62, %v409_v63 }
 0x22b   : > { %432 = vrot.lane.b32.xlu1 %v421_v61, %s3084_s9 }
 0x22c   : > { %428 = vrot.lane.b32.xlu0 %v419_v0, %s3084_s9  ;;  %v391_v1 = vpop.permute.xlu1 %390 }
 0x22d   : > { %v387_v3 = vpop.permute.xlu0 %386  ;;  %v400_v6 = vmul.f32 %v2900_v53, %v391_v1 }
 0x22e   : > { %v398_v9 = vmul.f32 %v2902_v55, %v387_v3 }
 0x230   : > { %v393_v4 = vpop.permute.xlu1 %392 }
 0x231   : > { %v389_v5 = vpop.permute.xlu0 %388  ;;  %v401_v21 = vmul.f32 %v3310_v59, %v393_v4 }
 0x232   : > { %v399_v23 = vmul.f32 %v3313_v62, %v389_v5 }
 0x299   : > { %v431_v12 = vpop.permute.xlu1 %430 }
 0x29a   : > { %v3318_v18 = vadd.f32 %v431_v12, %v400_v6  ;;  %v427_v19 = vpop.permute.xlu0 %426 }
 0x29b   : > { %v3320_v20 = vadd.f32 %v427_v19, %v398_v9 }
 0x29c   : > { %2907 = vtanh.f32 %v3318_v18 }
 0x29d   : > { %2909 = vtanh.f32 %v3320_v20  ;;  %v433_v22 = vpop.permute.xlu1 %432 }
 0x29e   : > { %v3326_v24 = vadd.f32 %v433_v22, %v401_v21  ;;  %v429_v25 = vpop.permute.xlu0 %428 }
 0x29f   : > { %v3329_v26 = vadd.f32 %v429_v25, %v399_v23 }
 0x2a0   : > { %2911 = vtanh.f32 %v3326_v24 }
 0x2a1   : > { %2913 = vtanh.f32 %v3329_v26 }
 0x2a6   : > { %v2908_v27 = vpop.eup %2907 }
 0x2a7   : > { %v2910_v28 = vpop.eup %2909  ;;  %475 = vrot.lane.b32.xlu1 %v2908_v27, %s3084_s9 }
 0x2a8   : > { %471 = vrot.lane.b32.xlu0 %v2910_v28, %s3084_s9 }
 0x2aa   : > { %v2912_v29 = vpop.eup %2911 }
 0x2ab   : > { %477 = vrot.lane.b32.xlu1 %v2912_v29, %s3084_s9  ;;  %v2914_v30 = vpop.eup %2913 }
 0x2ac   : > { %473 = vrot.lane.b32.xlu0 %v2914_v30, %s3084_s9 }
 0x319   : > { %v476_v35 = vpop.permute.xlu1 %475 }
 0x31a   : > { %v3339_v36 = vmul.f32 %v2900_v53, %v476_v35  ;;  %v472_v37 = vpop.permute.xlu0 %471 }
 0x31b   : > { %v3341_v38 = vmul.f32 %v2902_v55, %v472_v37 }
 0x31c   : > { %v542_v39 = vcombine.high %v3339_v36, %v3339_v36  ;;  %v549_v40 = vrot.slane %v3339_v36, %v3337_v34 }
 0x31d   : > { %v508_v41 = vcombine.high %v3341_v38, %v3341_v38  ;;  %v515_v42 = vrot.slane %v3341_v38, %v3337_v34 }
 0x31e   : > { %v556_v43 = vrot.slane %v542_v39, %v3337_v34  ;;  %v557_v44 = vcombine.high %v549_v40, %v549_v40  ;;  %v649_v45 = vsel %vm592_vm13, %v549_v40, -inf }
 0x31f   : > { %v650_v46 = vrot.slane %v649_v45, 4  ;;  %v522_v47 = vrot.slane %v508_v41, %v3337_v34  ;;  %v523_v48 = vcombine.high %v515_v42, %v515_v42  ;;  %v593_v49 = vsel %vm592_vm13, %v515_v42, -inf }
 0x320   : > { %v558_v50 = vcombine.high %v556_v43, %v556_v43  ;;  %v656_v51 = vsel %vm592_vm13, %v557_v44, -inf  ;;  %v663_v52 = vsel %vm592_vm13, %v556_v43, -inf  ;;  %v594_v53 = vrot.slane %v593_v49, 4 }
 0x321   : > { %v651_v54 = vmax.f32 %v649_v45, %v650_v46  ;;  %v657_v55 = vrot.slane %v656_v51, 4  ;;  %v664_v56 = vrot.slane %v663_v52, 4  ;;  %v524_v57 = vcombine.high %v522_v47, %v522_v47 }
 0x322   : > { %v670_v58 = vsel %vm592_vm13, %v558_v50, -inf  ;;  %v595_v60 = vmax.f32 %v593_v49, %v594_v53  ;;  %v600_v61 = vsel %vm592_vm13, %v523_v48, -inf  ;;  %v607_v63 = vsel %vm592_vm13, %v522_v47, -inf }
 0x323   : > { %v652_v0 = vrot.slane %v651_v54, 2  ;;  %v658_v1 = vmax.f32 %v656_v51, %v657_v55  ;;  %v665_v3 = vmax.f32 %v663_v52, %v664_v56  ;;  %v671_v4 = vrot.slane %v670_v58, 4  ;;  %v478_v56 = vpop.permute.xlu1 %477 }
 0x324   : > { %v596_v5 = vrot.slane %v595_v60, 2  ;;  %v601_v6 = vrot.slane %v600_v61, 4  ;;  %v608_v9 = vrot.slane %v607_v63, 4  ;;  %v614_v12 = vsel %vm592_vm13, %v524_v57, -inf  ;;  %v474_v57 = vpop.permute.xlu0 %473 }
 0x325   : > { %v653_v19 = vmax.f32 %v651_v54, %v652_v0  ;;  %v659_v21 = vrot.slane %v658_v1, 2  ;;  %v666_v22 = vrot.slane %v665_v3, 2  ;;  %v672_v23 = vmax.f32 %v670_v58, %v671_v4 }
 0x326   : > { %v597_v25 = vmax.f32 %v595_v60, %v596_v5  ;;  %v602_v27 = vmax.f32 %v600_v61, %v601_v6  ;;  %v609_v28 = vmax.f32 %v607_v63, %v608_v9  ;;  %v615_v29 = vrot.slane %v614_v12, 4 }
 0x327   : > { %v654_v30 = vrot.slane %v653_v19, 1  ;;  %v660_v31 = vmax.f32 %v658_v1, %v659_v21  ;;  %v667_v32 = vmax.f32 %v665_v3, %v666_v22  ;;  %v673_v33 = vrot.slane %v672_v23, 2 }
 0x328   : > { %v598_v35 = vrot.slane %v597_v25, 1  ;;  %v603_v37 = vrot.slane %v602_v27, 2  ;;  %v610_v39 = vrot.slane %v609_v28, 2  ;;  %v616_v40 = vmax.f32 %v614_v12, %v615_v29 }
 0x329   : > { %v655_v41 = vmax.f32 %v653_v19, %v654_v30  ;;  %v661_v42 = vrot.slane %v660_v31, 1  ;;  %v668_v43 = vrot.slane %v667_v32, 1  ;;  %v674_v44 = vmax.f32 %v672_v23, %v673_v33 }
 0x32a   : > { %v599_v45 = vmax.f32 %v597_v25, %v598_v35  ;;  %v604_v46 = vmax.f32 %v602_v27, %v603_v37  ;;  %v611_v47 = vmax.f32 %v609_v28, %v610_v39  ;;  %v617_v48 = vrot.slane %v616_v40, 2 }
 0x32b   : > { %v662_v49 = vmax.f32 %v660_v31, %v661_v42  ;;  %v669_v50 = vmax.f32 %v667_v32, %v668_v43  ;;  %v675_v51 = vrot.slane %v674_v44, 1  ;;  %vm713_vm14 = vcmp.gt.f32.partialorder %v655_v41, 0.05 }
 0x32c   : > { %v605_v52 = vrot.slane %v604_v46, 1  ;;  %v612_v53 = vrot.slane %v611_v47, 1  ;;  %v618_v54 = vmax.f32 %v616_v40, %v617_v48  ;;  %vm705_vm8 = vcmp.gt.f32.partialorder %v599_v45, 0.05 }
 0x32d   : > { %v676_v55 = vmax.f32 %v674_v44, %v675_v51  ;;  %vm714_vm1 = vcmp.gt.f32.partialorder %v662_v49, 0.05  ;;  %vm715_vm6 = vcmp.gt.f32.partialorder %v669_v50, 0.05  ;;  %v3086_v61 = vmov 0.0  }
 0x32e   : > { %v606_v58 = vmax.f32 %v604_v46, %v605_v52  ;;  %v613_v60 = vmax.f32 %v611_v47, %v612_v53  ;;  %v2451_v63 = vsel %vm713_vm14, 1.0, %v3086_v61  ;;  %v2452_v0 = vsel %vm714_vm1, 1.0, %v3086_v61 }
 0x32f   : > { %vm716_vm11 = vcmp.gt.f32.partialorder %v676_v55, 0.05  ;;  %v619_v1 = vrot.slane %v618_v54, 1  ;;  %v3365_v3 = vmul.f32 %v3310_v59, %v478_v56  ;;  %v3368_v4 = vmul.f32 %v3313_v62, %v474_v57 }
 0x330   : > { %vm706_vm12 = vcmp.gt.f32.partialorder %v606_v58, 0.05  ;;  %vm707_vm0 = vcmp.gt.f32.partialorder %v613_v60, 0.05  ;;  %v3371_v5 = vsel %vm715_vm6, 1.0, %v3086_v61  ;;  %v2443_v6 = vsel %vm705_vm8, 1.0, %v3086_v61 }
 0x331   : > { %v2444_v9 = vsel %vm706_vm12, 1.0, %v3086_v61  ;;  %v2445_v12 = vsel %vm707_vm0, 1.0, %v3086_v61  ;;  %v559_v21 = vcombine.high %v3365_v3, %v3365_v3  ;;  %v566_v59 = vrot.slane %v3365_v3, %v3337_v34 }
 0x332   : > { %v770_v19 = vsel %vm3765_vm15, %v2444_v9, %v2443_v6  ;;  %v525_v62 = vcombine.high %v3368_v4, %v3368_v4  ;;  %v3384_v22 = vsel %vm3765_vm15, %v2452_v0, %v2451_v63  ;;  %v3386_v23 = vmax.f32 %v618_v54, %v619_v1 }
 0x333   : > { %v532_v25 = vrot.slane %v3368_v4, %v3337_v34  ;;  %v3392_v27 = vsel %vm716_vm11, 1.0, %v3086_v61  ;;  %v573_v28 = vrot.slane %v559_v21, %v3337_v34  ;;  %v574_v29 = vcombine.high %v566_v59, %v566_v59 }
 0x334   : > { %v677_v30 = vsel %vm592_vm13, %v566_v59, -inf  ;;  %v539_v31 = vrot.slane %v525_v62, %v3337_v34  ;;  %v3399_v37 = vsel %vm3766_vm4, %v2445_v12, %v770_v19  ;;  %vm708_vm0 = vcmp.gt.f32.partialorder %v3386_v23, 0.05 }
 0x335   : > { %v678_v32 = vrot.slane %v677_v30, 4  ;;  %v540_v33 = vcombine.high %v532_v25, %v532_v25  ;;  %v621_v35 = vsel %vm592_vm13, %v532_v25, -inf  ;;  %v575_v39 = vcombine.high %v573_v28, %v573_v28 }
 0x336   : > { %v684_v40 = vsel %vm592_vm13, %v574_v29, -inf  ;;  %v691_v41 = vsel %vm592_vm13, %v573_v28, -inf  ;;  %v541_v42 = vcombine.high %v539_v31, %v539_v31  ;;  %v622_v46 = vrot.slane %v621_v35, 4 }
 0x337   : > { %v679_v43 = vmax.f32 %v677_v30, %v678_v32  ;;  %v685_v44 = vrot.slane %v684_v40, 4  ;;  %v692_v45 = vrot.slane %v691_v41, 4  ;;  %v698_v47 = vsel %vm592_vm13, %v575_v39, -inf }
 0x338   : > { %v628_v48 = vsel %vm592_vm13, %v540_v33, -inf  ;;  %v635_v49 = vsel %vm592_vm13, %v539_v31, -inf  ;;  %v642_v50 = vsel %vm592_vm13, %v541_v42, -inf  ;;  %v699_v54 = vrot.slane %v698_v47, 4 }
 0x339   : > { %v680_v51 = vrot.slane %v679_v43, 2  ;;  %v686_v52 = vmax.f32 %v684_v40, %v685_v44  ;;  %v693_v53 = vmax.f32 %v691_v41, %v692_v45  ;;  %v623_v55 = vmax.f32 %v621_v35, %v622_v46 }
 0x33a   : > { %v629_v56 = vrot.slane %v628_v48, 4  ;;  %v636_v57 = vrot.slane %v635_v49, 4  ;;  %v643_v58 = vrot.slane %v642_v50, 4  ;;  %v700_v1 = vmax.f32 %v698_v47, %v699_v54 }
 0x33b   : > { %v681_v60 = vmax.f32 %v679_v43, %v680_v51  ;;  %v687_v63 = vrot.slane %v686_v52, 2  ;;  %v694_v0 = vrot.slane %v693_v53, 2  ;;  %vm773_vm14 = vcmask 1043459  }
 0x33c   : > { %v624_v6 = vrot.slane %v623_v55, 2  ;;  %v630_v9 = vmax.f32 %v628_v48, %v629_v56  ;;  %v637_v12 = vmax.f32 %v635_v49, %v636_v57  ;;  %v644_v19 = vmax.f32 %v642_v50, %v643_v58 }
 0x33d   : > { %vm775_vm1 = vcmask 1044484   ;;  %v682_v21 = vrot.slane %v681_v60, 1  ;;  %v688_v59 = vmax.f32 %v686_v52, %v687_v63  ;;  %v695_v62 = vmax.f32 %v693_v53, %v694_v0 }
 0x33e   : > { %v701_v25 = vrot.slane %v700_v1, 2  ;;  %vm777_vm13 = vcmask 1045509   ;;  %v625_v28 = vmax.f32 %v623_v55, %v624_v6  ;;  %v631_v29 = vrot.slane %v630_v9, 2 }
 0x33f   : > { %v638_v30 = vrot.slane %v637_v12, 2  ;;  %v645_v31 = vrot.slane %v644_v19, 2  ;;  %vm779_vm6 = vcmask 1046534   ;;  %v683_v32 = vmax.f32 %v681_v60, %v682_v21 }
 0x340   : > { %v689_v33 = vrot.slane %v688_v59, 1  ;;  %v696_v35 = vrot.slane %v695_v62, 1  ;;  %v702_v39 = vmax.f32 %v700_v1, %v701_v25  ;;  %vm781_vm8 = vcmask 1047559  }
 0x341   : > { %v626_v40 = vrot.slane %v625_v28, 1  ;;  %v632_v41 = vmax.f32 %v630_v9, %v631_v29  ;;  %v639_v42 = vmax.f32 %v637_v12, %v638_v30  ;;  %v646_v43 = vmax.f32 %v644_v19, %v645_v31  ;;  %v2740_v29 = vld [vmem:[#allocation10] sm:$0xff]   ;;  %v2741_v30 = vld [vmem:[#allocation10 + $0x8] sm:$0xff]   ;;  %v2742_v31 = vld [vmem:[#allocation10 + $0x10] sm:$0xff]  }
 0x342   : > { %vm717_vm11 = vcmp.gt.f32.partialorder %v683_v32, 0.05  ;;  %v690_v44 = vmax.f32 %v688_v59, %v689_v33  ;;  %v697_v45 = vmax.f32 %v695_v62, %v696_v35  ;;  %v703_v46 = vrot.slane %v702_v39, 1  ;;  %v2743_v32 = vld [vmem:[#allocation10 + $0x18] sm:$0xff]   ;;  %v2744_v33 = vld [vmem:[#allocation10 + $0x20] sm:$0xff]   ;;  %v2745_v35 = vld [vmem:[#allocation10 + $0x28] sm:$0xff]  }
 0x343   : > { %v627_v47 = vmax.f32 %v625_v28, %v626_v40  ;;  %v633_v48 = vrot.slane %v632_v41, 1  ;;  %v640_v49 = vrot.slane %v639_v42, 1  ;;  %v784_v50 = vsel %vm3766_vm4, %v3371_v5, %v3384_v22  ;;  %v2747_v40 = vld [vmem:[#allocation10 + $0x38] sm:$0xff]  }
 0x344   : > { %v647_v51 = vrot.slane %v646_v43, 1  ;;  %v704_v52 = vmax.f32 %v702_v39, %v703_v46  ;;  %vm718_vm12 = vcmp.gt.f32.partialorder %v690_v44, 0.05  ;;  %v2446_v53 = vsel %vm708_vm0, 1.0, %v3086_v61  ;;  %v2746_v39 = vld [vmem:[#allocation10 + $0x30] sm:$0xff]   ;;  %v2748_v44 = vld [vmem:[#allocation10 + $0x40] sm:$0xff]  }
 0x345   : > { %v2455_v54 = vsel %vm717_vm11, 1.0, %v3086_v61  ;;  %vm709_vm7 = vcmp.gt.f32.partialorder %v627_v47, 0.05  ;;  %v634_v55 = vmax.f32 %v632_v41, %v633_v48  ;;  %v641_v56 = vmax.f32 %v639_v42, %v640_v49 }
 0x346   : > { %v2447_v57 = vsel %vm709_vm7, 1.0, %v3086_v61  ;;  %v648_v58 = vmax.f32 %v646_v43, %v647_v51  ;;  %vm719_vm5 = vcmp.gt.f32.partialorder %v697_v45, 0.05  ;;  %v2456_v60 = vsel %vm718_vm12, 1.0, %v3086_v61 }
 0x347   : > { %vm710_vm15 = vcmp.gt.f32.partialorder %v634_v55, 0.05  ;;  %vm711_vm4 = vcmp.gt.f32.partialorder %v641_v56, 0.05  ;;  %vm720_vm3 = vcmp.gt.f32.partialorder %v704_v52, 0.05  ;;  %v774_v5 = vsel %vm773_vm14, %v2446_v53, %v3399_v37 }
 0x348   : > { %vm712_vm9 = vcmp.gt.f32.partialorder %v648_v58, 0.05  ;;  %v2448_v22 = vsel %vm710_vm15, 1.0, %v3086_v61  ;;  %v2449_v23 = vsel %vm711_vm4, 1.0, %v3086_v61  ;;  %v776_v63 = vsel %vm775_vm1, %v2447_v57, %v774_v5 }
 0x349   : > { %v2450_v0 = vsel %vm712_vm9, 1.0, %v3086_v61  ;;  %v2457_v1 = vsel %vm719_vm5, 1.0, %v3086_v61  ;;  %v778_v6 = vsel %vm777_vm13, %v2448_v22, %v776_v63  ;;  %v785_v9 = vsel %vm773_vm14, %v3392_v27, %v784_v50 }
 0x34a   : > { %v2458_v12 = vsel %vm720_vm3, 1.0, %v3086_v61  ;;  %v780_v37 = vsel %vm779_vm6, %v2449_v23, %v778_v6  ;;  %v786_v19 = vsel %vm775_vm1, %v2455_v54, %v785_v9  ;;  %v3088_v27 = vmov 0  }
 0x34b   : > { %v782_v21 = vsel %vm781_vm8, %v2450_v0, %v780_v37  ;;  %v787_v59 = vsel %vm777_vm13, %v2456_v60, %v786_v19  ;;  %913 = vmatprep.subr.bf16.mxu1 %v3088_v27  ;;  %vm3770_vm3 = vcmask 1046528   ;;  %vm833_vm7 = vcmask 785408  }
 0x34c   : > { %v788_v62 = vsel %vm779_vm6, %v2457_v1, %v787_v59  ;;  %914 = vmatpush1.bf16.msra.mxu1 %v2740_v29  ;;  %vm3771_vm5 = vmmov %vm3770_vm3  ;;  %vm3772_vm9 = vcmask 392192   ;;  %vm1076_vm15 = vcmask 779776  }
 0x34d   : > { %v789_v25 = vsel %vm781_vm8, %v2458_v12, %v788_v62  ;;  %915 = vmatprep.subr.bf16.mxu1 %v3088_v27  ;;  %vm3774_vm8 = vcmask 1041409  }
 0x34e   : > { %v2716_v28 = vpack.i.bf16 %v789_v25, %v782_v21 }
 0x350   : > { %2717 = vrot.lane.b32.xlu0 %v2716_v28, %s3087_s24  ;;  %916 = vmatpush1.bf16.msra.mxu1 %v2741_v30 }
 0x351   : > { %917 = vmatprep.subr.bf16.mxu1 %v3088_v27 }
 0x354   : > { %918 = vmatpush1.bf16.msra.mxu1 %v2742_v31 }
 0x355   : > { %919 = vmatprep.subr.bf16.mxu1 %v3088_v27 }
 0x358   : > { %920 = vmatpush1.bf16.msra.mxu1 %v2743_v32 }
 0x359   : > { %921 = vmatprep.subr.bf16.mxu1 %v3088_v27 }
 0x35c   : > { %922 = vmatpush1.bf16.msra.mxu1 %v2744_v33 }
 0x35d   : > { %923 = vmatprep.subr.bf16.mxu1 %v3088_v27 }
 0x360   : > { %924 = vmatpush1.bf16.msra.mxu1 %v2745_v35 }
 0x361   : > { %925 = vmatprep.subr.bf16.mxu1 %v3088_v27 }
 0x364   : > { %926 = vmatpush1.bf16.msra.mxu1 %v2746_v39  ;;  %v968_v39 = vld [vmem:[#allocation5] sm:$0xff] }
 0x365   : > { %927 = vmatprep.subr.bf16.mxu1 %v3088_v27 }
 0x368   : > { %928 = vmatpush1.bf16.msra.mxu1 %v2747_v40 }
 0x369   : > { %929 = vmatprep.subr.bf16.mxu1 %v3088_v27 }
 0x36c   : > { %930 = vmatpush1.bf16.msra.mxu1 %v2748_v44 }
 0x3c2   : > { %v2718_v41 = vpop.permute.xlu0 %2717 }
 0x3c3   : > { %v2720_v42 = vunpack.i.h.bf16 %v2718_v41  ;;  %v2719_v43 = vunpack.i.l.bf16 %v2718_v41  ;;  %v969_v41 = vld [vmem:[#allocation5 + $0x8] sm:$0xff] }
 0x3c5   : > { %797 = vst.msk [vmem:[#allocation4 + $0x11] sm:$0xff] %vm96_vm2, %v2720_v42  ;;  %796 = vst.msk [vmem:[#allocation4 + $0x1] sm:$0xff] %vm96_vm2, %v2719_v43 }
 0x3cc   : > { %v798_v45 = vld [vmem:[#allocation4] sm:$0xff]  ;;  %v799_v46 = vld [vmem:[#allocation4 + $0x8] sm:$0x3]  ;;  %v800_v47 = vld [vmem:[#allocation4 + $0x10] sm:$0xff] }
 0x3cd   : > { %v801_v48 = vld [vmem:[#allocation4 + $0x18] sm:$0x3]  ;;  %v818_v49 = vrot.slane %v798_v45, 2  ;;  %v819_v50 = vrot.slane %v799_v46, 2  ;;  %v821_v51 = vrot.slane %v800_v47, 2  ;;  %v806_v52 = vrot.slane %v798_v45, 1 }
 0x3ce   : > { %v822_v53 = vrot.slane %v801_v48, 2  ;;  %v807_v54 = vrot.slane %v799_v46, 1  ;;  %v809_v55 = vrot.slane %v800_v47, 1  ;;  %v810_v56 = vrot.slane %v801_v48, 1 }
 0x3cf   : > { %v820_v57 = vsel %vm225_vm10, %v818_v49, %v819_v50 }
 0x3d0   : > { %v823_v58 = vsel %vm225_vm10, %v821_v51, %v822_v53  ;;  %v808_v60 = vsel %vm3770_vm3, %v806_v52, %v807_v54  ;;  %v811_v5 = vsel %vm3771_vm5, %v809_v55, %v810_v56  ;;  %vm3773_vm10 = vmmov %vm3772_vm9  ;;  %vm3775_vm5 = vcmask 1042434  }
 0x3d1   : > { %v2726_v22 = vpack.i.bf16 %v823_v58, %v820_v57  ;;  %v2721_v23 = vpack.i.bf16 %v811_v5, %v808_v60 }
 0x3d3   : > { %2727 = vrot.lane.b32.xlu0 %v2726_v22, %s3087_s24  ;;  %2722 = vrot.lane.b32.xlu1 %v2721_v23, %s3089_s25 }
 0x445   : > { %v2728_v63 = vpop.permute.xlu0 %2727  ;;  %v2723_v0 = vpop.permute.xlu1 %2722 }
 0x446   : > { %v2730_v1 = vunpack.i.h.bf16 %v2728_v63  ;;  %v2729_v6 = vunpack.i.l.bf16 %v2728_v63  ;;  %v2725_v9 = vunpack.i.h.bf16 %v2723_v0  ;;  %v2724_v12 = vunpack.i.l.bf16 %v2723_v0 }
 0x448   : > { %v832_v37 = vsel %vm3772_vm9, %v800_v47, %v2725_v9  ;;  %v831_v19 = vsel %vm3773_vm10, %v798_v45, %v2724_v12  ;;  %v837_v21 = vpack.c.bf16 %v2730_v1, %v2729_v6  ;;  %vm3776_vm9 = vmmov %vm3774_vm8 }
 0x449   : > { %v834_v59 = vsel %vm833_vm7, %v831_v19, %v2729_v6  ;;  %v835_v62 = vsel %vm833_vm7, %v832_v37, %v2730_v1  ;;  %vm3777_vm10 = vmmov %vm3775_vm5 }
 0x44a   : > { %2468 = vmatprep.mubr.msk.bf16.mxu1 %vm96_vm2, %v837_v21  ;;  %v836_v25 = vpack.c.bf16 %v835_v62, %v834_v59 }
 0x44c   : > { %946 = vmatmul.mubr.bf16.vlgmr.msra.gmra.mrb[0].mxu1 %v836_v25 }
 0x44d   : > { %1921 = vmatprep.mubr.bf16.mxu1 %v3088_v27 }
 0x51f   : > { %v947_v28 = vpop.f32.mrb[0].mxu1 }
 0x520   : > { %v948_v29 = vadd.f32 %v3228_v8, %v947_v28  ;;  %v949_v30 = vpop.f32.mrb[1].mxu1 }
 0x521   : > { %v950_v31 = vpop.f32.mrb[2].mxu1 }
 0x522   : > { %2915 = vtanh.f32 %v948_v29  ;;  %v951_v32 = vadd.f32 %v3228_v8, %v950_v31  ;;  %v952_v33 = vpop.f32.mrb[3].mxu1  ;;  %v2469_v42 = vmul.f32 -1.442695, %v948_v29 }
 0x524   : > { %2917 = vtanh.f32 %v951_v32  ;;  %v2470_v43 = vmul.f32 -1.442695, %v951_v32 }
 0x525   : > { %2919 = vpow2.f32 %v2469_v42 }
 0x526   : > { %2921 = vpow2.f32 %v2470_v43 }
 0x52c   : > { %v2916_v35 = vpop.eup %2915 }
 0x52d   : > { %982 = vrot.lane.b32.xlu1 %v2916_v35, %s3090_s26 }
 0x52e   : > { %v2918_v40 = vpop.eup %2917 }
 0x52f   : > { %984 = vrot.lane.b32.xlu0 %v2918_v40, %s3090_s26  ;;  %v2920_v44 = vpop.eup %2919 }
 0x530   : > { %v2922_v45 = vpop.eup %2921  ;;  %v960_v46 = vadd.f32 1.0, %v2920_v44 }
 0x531   : > { %972 = vrot.lane.b32.xlu1 %v968_v39, %s3090_s26  ;;  %v961_v47 = vadd.f32 1.0, %v2922_v45 }
 0x532   : > { %2923 = vrcp.f32 %v960_v46 }
 0x533   : > { %974 = vrot.lane.b32.xlu0 %v969_v41, %s3090_s26  ;;  %2925 = vrcp.f32 %v961_v47 }
 0x53c   : > { %v2924_v48 = vpop.eup %2923 }
 0x53d   : > { %v2926_v51 = vpop.eup %2925 }
 0x59f   : > { %v983_v49 = vpop.permute.xlu1 %982 }
 0x5a0   : > { %v988_v50 = vmul.f32 %v2924_v48, %v983_v49 }
 0x5a1   : > { %v985_v52 = vpop.permute.xlu0 %984 }
 0x5a2   : > { %992 = vrot.lane.b32.xlu1 %v988_v50, %s3090_s26  ;;  %v989_v53 = vmul.f32 %v2926_v51, %v985_v52 }
 0x5a3   : > { %v973_v54 = vpop.permute.xlu1 %972 }
 0x5a4   : > { %994 = vrot.lane.b32.xlu0 %v989_v53, %s3090_s26  ;;  %v978_v55 = vmul.f32 %v2924_v48, %v973_v54 }
 0x5a5   : > { %v975_v56 = vpop.permute.xlu0 %974 }
 0x5a6   : > { %v979_v60 = vmul.f32 %v2926_v51, %v975_v56 }
 0x614   : > { %v993_v57 = vpop.permute.xlu1 %992 }
 0x615   : > { %v3465_v58 = vadd.f32 %v993_v57, %v978_v55 }
 0x616   : > { %v995_v5 = vpop.permute.xlu0 %994 }
 0x617   : > { %2927 = vtanh.f32 %v3465_v58  ;;  %v3468_v22 = vadd.f32 %v995_v5, %v979_v60 }
 0x619   : > { %2929 = vtanh.f32 %v3468_v22 }
 0x621   : > { %v2928_v23 = vpop.eup %2927 }
 0x622   : > { %1015 = vrot.lane.b32.xlu1 %v2928_v23, %s3090_s26 }
 0x623   : > { %v2930_v63 = vpop.eup %2929 }
 0x624   : > { %1017 = vrot.lane.b32.xlu0 %v2930_v63, %s3090_s26 }
 0x694   : > { %v1016_v0 = vpop.permute.xlu1 %1015 }
 0x695   : > { %v3473_v1 = vmul.f32 %v2924_v48, %v1016_v0 }
 0x696   : > { %v1018_v12 = vpop.permute.xlu0 %1017 }
 0x697   : > { %v1034_v6 = vcombine.high %v3473_v1, %v3473_v1  ;;  %v1041_v9 = vrot.slane %v3473_v1, %v3337_v34  ;;  %v3479_v37 = vmul.f32 %v2926_v51, %v1018_v12 }
 0x699   : > { %v1048_v19 = vrot.slane %v1034_v6, %v3337_v34  ;;  %v1049_v21 = vcombine.high %v1041_v9, %v1041_v9  ;;  %v1077_v59 = vsel %vm1076_vm15, %v1041_v9, -inf  ;;  %v1051_v25 = vcombine.high %v3479_v37, %v3479_v37 }
 0x69a   : > { %v1078_v62 = vrot.slane %v1077_v59, 4  ;;  %v1058_v28 = vrot.slane %v3479_v37, %v3337_v34 }
 0x69b   : > { %v1050_v29 = vcombine.high %v1048_v19, %v1048_v19  ;;  %v1084_v30 = vsel %vm1076_vm15, %v1049_v21, -inf  ;;  %v1091_v31 = vsel %vm1076_vm15, %v1048_v19, -inf  ;;  %v1065_v39 = vrot.slane %v1051_v25, %v3337_v34 }
 0x69c   : > { %v1079_v32 = vmax.f32 %v1077_v59, %v1078_v62  ;;  %v1085_v33 = vrot.slane %v1084_v30, 4  ;;  %v1092_v35 = vrot.slane %v1091_v31, 4  ;;  %v1066_v41 = vcombine.high %v1058_v28, %v1058_v28 }
 0x69d   : > { %v1098_v40 = vsel %vm1076_vm15, %v1050_v29, -inf  ;;  %v1105_v42 = vsel %vm1076_vm15, %v1058_v28, -inf  ;;  %v1067_v47 = vcombine.high %v1065_v39, %v1065_v39  ;;  %v1119_v50 = vsel %vm1076_vm15, %v1065_v39, -inf }
 0x69e   : > { %v1080_v43 = vrot.slane %v1079_v32, 2  ;;  %v1086_v44 = vmax.f32 %v1084_v30, %v1085_v33  ;;  %v1093_v45 = vmax.f32 %v1091_v31, %v1092_v35  ;;  %v1099_v46 = vrot.slane %v1098_v40, 4 }
 0x69f   : > { %v1106_v48 = vrot.slane %v1105_v42, 4  ;;  %v1112_v49 = vsel %vm1076_vm15, %v1066_v41, -inf  ;;  %v1120_v57 = vrot.slane %v1119_v50, 4  ;;  %v1126_v60 = vsel %vm1076_vm15, %v1067_v47, -inf }
 0x6a0   : > { %v1081_v51 = vmax.f32 %v1079_v32, %v1080_v43  ;;  %v1087_v52 = vrot.slane %v1086_v44, 2  ;;  %v1094_v53 = vrot.slane %v1093_v45, 2  ;;  %v1100_v54 = vmax.f32 %v1098_v40, %v1099_v46 }
 0x6a1   : > { %v1107_v55 = vmax.f32 %v1105_v42, %v1106_v48  ;;  %v1113_v56 = vrot.slane %v1112_v49, 4  ;;  %v1127_v0 = vrot.slane %v1126_v60, 4  ;;  %v1121_v12 = vmax.f32 %v1119_v50, %v1120_v57 }
 0x6a2   : > { %v1082_v5 = vrot.slane %v1081_v51, 1  ;;  %v1088_v23 = vmax.f32 %v1086_v44, %v1087_v52  ;;  %v1095_v63 = vmax.f32 %v1093_v45, %v1094_v53  ;;  %v1101_v19 = vrot.slane %v1100_v54, 2 }
 0x6a3   : > { %v1108_v6 = vrot.slane %v1107_v55, 2  ;;  %v1114_v9 = vmax.f32 %v1112_v49, %v1113_v56  ;;  %v1128_v62 = vmax.f32 %v1126_v60, %v1127_v0  ;;  %v1122_v30 = vrot.slane %v1121_v12, 2 }
 0x6a4   : > { %v1083_v21 = vmax.f32 %v1081_v51, %v1082_v5  ;;  %v1089_v59 = vrot.slane %v1088_v23, 1  ;;  %v1096_v25 = vrot.slane %v1095_v63, 1  ;;  %v1102_v31 = vmax.f32 %v1100_v54, %v1101_v19 }
 0x6a5   : > { %v1109_v28 = vmax.f32 %v1107_v55, %v1108_v6  ;;  %v1115_v29 = vrot.slane %v1114_v9, 2  ;;  %v1129_v35 = vrot.slane %v1128_v62, 2  ;;  %v1123_v41 = vmax.f32 %v1121_v12, %v1122_v30  ;;  %v2760_v30 = vld [vmem:[%s3754_s5 + $0x34] ss:$8 sps:$4 sm:$0xff]  }
 0x6a6   : > { %vm1133_vm4 = vcmp.gt.f32.partialorder %v1083_v21, 0.05  ;;  %v1090_v32 = vmax.f32 %v1088_v23, %v1089_v59  ;;  %v1097_v33 = vmax.f32 %v1095_v63, %v1096_v25  ;;  %v1103_v42 = vrot.slane %v1102_v31, 1  ;;  %v2749_v21 = vld [vmem:[%s3754_s5] ss:$8 sps:$4 sm:$0xff]  }
 0x6a7   : > { %v1110_v39 = vrot.slane %v1109_v28, 1  ;;  %v1116_v40 = vmax.f32 %v1114_v9, %v1115_v29  ;;  %v1130_v43 = vmax.f32 %v1128_v62, %v1129_v35  ;;  %v1124_v47 = vrot.slane %v1123_v41, 1  ;;  %v2751_v59 = vld [vmem:[%s3754_s5 + $0x4] ss:$8 sps:$4 sm:$0xff]   ;;  %v2754_v62 = vld [vmem:[%s3754_s5 + $0x14] ss:$8 sps:$4 sm:$0xff]  }
 0x6a8   : > { %vm1134_vm0 = vcmp.gt.f32.partialorder %v1090_v32, 0.05  ;;  %vm1135_vm1 = vcmp.gt.f32.partialorder %v1097_v33, 0.05  ;;  %v1104_v46 = vmax.f32 %v1102_v31, %v1103_v42  ;;  %v2471_v49 = vsel %vm1133_vm4, 1.0, %v3086_v61  ;;  %1439 = vmatprep.subr.bf16.mxu0 %v2751_v59 }
 0x6a9   : > { %v1111_v44 = vmax.f32 %v1109_v28, %v1110_v39  ;;  %v1117_v45 = vrot.slane %v1116_v40, 1  ;;  %v1131_v48 = vrot.slane %v1130_v43, 1  ;;  %v2472_v50 = vsel %vm1134_vm0, 1.0, %v3086_v61  ;;  %1440 = vmatpush1.bf16.msra.mxu0 %v2749_v21  ;;  %v2752_v25 = vld [vmem:[%s3754_s5 + $0x10] ss:$8 sps:$4 sm:$0xff]  }
 0x6aa   : > { %v2473_v51 = vsel %vm1135_vm1, 1.0, %v3086_v61  ;;  %v1125_v53 = vmax.f32 %v1123_v41, %v1124_v47  ;;  %vm1136_vm6 = vcmp.gt.f32.partialorder %v1104_v46, 0.05  ;;  %v1165_v55 = vsel %vm3774_vm8, %v2472_v50, %v2471_v49  ;;  %1441 = vmatprep.subr.bf16.mxu0 %v2754_v62  ;;  %v2757_v28 = vld [vmem:[%s3754_s5 + $0x24] ss:$8 sps:$4 sm:$0xff]  }
 0x6ab   : > { %vm1137_vm13 = vcmp.gt.f32.partialorder %v1111_v44, 0.05  ;;  %v1118_v52 = vmax.f32 %v1116_v40, %v1117_v45  ;;  %v1132_v54 = vmax.f32 %v1130_v43, %v1131_v48  ;;  %v2474_v56 = vsel %vm1136_vm6, 1.0, %v3086_v61  ;;  %v2755_v29 = vld [vmem:[%s3754_s5 + $0x20] ss:$8 sps:$4 sm:$0xff]  }
 0x6ac   : > { %vm1139_vm12 = vcmp.gt.f32.partialorder %v1125_v53, 0.05  ;;  %v2475_v57 = vsel %vm1137_vm13, 1.0, %v3086_v61  ;;  %v1166_v23 = vsel %vm3775_vm5, %v2473_v51, %v1165_v55  ;;  %v2758_v31 = vld [vmem:[%s3754_s5 + $0x30] ss:$8 sps:$4 sm:$0xff]   ;;  %vm1202_vm15 = vcmask 523264  }
 0x6ad   : > { %vm1138_vm11 = vcmp.gt.f32.partialorder %v1118_v52, 0.05  ;;  %vm1140_vm3 = vcmp.gt.f32.partialorder %v1132_v54, 0.05  ;;  %v2477_v5 = vsel %vm1139_vm12, 1.0, %v3086_v61  ;;  %v1167_v9 = vsel %vm773_vm14, %v2474_v56, %v1166_v23  ;;  %1442 = vmatpush1.bf16.msra.mxu0 %v2752_v25 }
 0x6ae   : > { %v2476_v60 = vsel %vm1138_vm11, 1.0, %v3086_v61  ;;  %v2478_v63 = vsel %vm1140_vm3, 1.0, %v3086_v61  ;;  %1443 = vmatprep.subr.bf16.mxu0 %v2757_v28  ;;  %v2763_v32 = vld [vmem:[%s3754_s5 + $0x44] ss:$8 sps:$4 sm:$0xff]   ;;  %v2761_v33 = vld [vmem:[%s3754_s5 + $0x40] ss:$8 sps:$4 sm:$0xff]   ;;  %vm3780_vm3 = vmmov %vm3776_vm9 }
 0x6af   : > { %v1168_v0 = vsel %vm3776_vm9, %v2476_v60, %v2475_v57  ;;  %v2766_v35 = vld [vmem:[%s3754_s5 + $0x54] ss:$8 sps:$4 sm:$0xff]   ;;  %v2764_v39 = vld [vmem:[%s3754_s5 + $0x50] ss:$8 sps:$4 sm:$0xff]   ;;  %v2769_v40 = vld [vmem:[%s3754_s5 + $0x64] ss:$8 sps:$4 sm:$0xff]  }
 0x6b0   : > { %v1169_v6 = vsel %vm3777_vm10, %v2477_v5, %v1168_v0  ;;  %v2767_v41 = vld [vmem:[%s3754_s5 + $0x60] ss:$8 sps:$4 sm:$0xff]   ;;  %v2772_v42 = vld [vmem:[%s3754_s5 + $0x74] ss:$8 sps:$4 sm:$0xff]   ;;  %v2770_v43 = vld [vmem:[%s3754_s5 + $0x70] ss:$8 sps:$4 sm:$0xff]  }
 0x6b1   : > { %v1170_v12 = vsel %vm773_vm14, %v2478_v63, %v1169_v6  ;;  %1444 = vmatpush1.bf16.msra.mxu0 %v2755_v29  ;;  %v2775_v44 = vld [vmem:[%s3754_s5 + $0x84] ss:$8 sps:$4 sm:$0xff]   ;;  %v2773_v45 = vld [vmem:[%s3754_s5 + $0x80] ss:$8 sps:$4 sm:$0xff]   ;;  %v2778_v46 = vld [vmem:[%s3754_s5 + $0x94] ss:$8 sps:$4 sm:$0xff]  }
 0x6b2   : > { %v2731_v19 = vpack.i.bf16 %v1170_v12, %v1167_v9  ;;  %1445 = vmatprep.subr.bf16.mxu0 %v2760_v30  ;;  %v2776_v47 = vld [vmem:[%s3754_s5 + $0x90] ss:$8 sps:$4 sm:$0xff]   ;;  %v2781_v48 = vld [vmem:[%s3754_s5 + $0xa4] ss:$8 sps:$4 sm:$0xff]   ;;  %v2779_v49 = vld [vmem:[%s3754_s5 + $0xa0] ss:$8 sps:$4 sm:$0xff]  }
 0x6b3   : > { %v2784_v50 = vld [vmem:[%s3754_s5 + $0xb4] ss:$8 sps:$4 sm:$0xff]   ;;  %v2782_v51 = vld [vmem:[%s3754_s5 + $0xb0] ss:$8 sps:$4 sm:$0xff]   ;;  %v2787_v52 = vld [vmem:[%s3754_s5 + $0xc4] ss:$8 sps:$4 sm:$0xff]  }
 0x6b4   : > { %2732 = vrot.lane.b32.xlu1 %v2731_v19, %s3091_s27  ;;  %v2785_v53 = vld [vmem:[%s3754_s5 + $0xc0] ss:$8 sps:$4 sm:$0xff]   ;;  %v2790_v54 = vld [vmem:[%s3754_s5 + $0xd4] ss:$8 sps:$4 sm:$0xff]   ;;  %v2788_v55 = vld [vmem:[%s3754_s5 + $0xd0] ss:$8 sps:$4 sm:$0xff]  }
 0x6b5   : > { %1446 = vmatpush1.bf16.msra.mxu0 %v2758_v31  ;;  %vm1177_vm14 = vcmask 257024   ;;  %v2793_v57 = vld [vmem:[%s3754_s5 + $0xe4] ss:$8 sps:$4 sm:$0xff]   ;;  %v2791_v23 = vld [vmem:[%s3754_s5 + $0xe0] ss:$8 sps:$4 sm:$0xff]   ;;  %vm1633_vm4 = vcmask 517120   ;;  %vm3781_vm5 = vmmov %vm3780_vm3 }
 0x6b6   : > { %1447 = vmatprep.subr.bf16.mxu0 %v2763_v32  ;;  %v2796_v63 = vld [vmem:[%s3754_s5 + $0xf4] ss:$8 sps:$4 sm:$0xff]   ;;  %v2794_v0 = vld [vmem:[%s3754_s5 + $0xf0] ss:$8 sps:$4 sm:$0xff]   ;;  %v2799_v6 = vld [vmem:[%s3754_s5 + $0x104] ss:$8 sps:$4 sm:$0xff]  }
 0x6b7   : > { %vm503_vm0 = vcmask 162848   ;;  %vm1031_vm12 = vcmask 392320   ;;  %vm3782_vm9 = vcmask 519168   ;;  %vm1610_vm10 = vcmask 781568  }
 0x6b9   : > { %1448 = vmatpush1.bf16.msra.mxu0 %v2761_v33 }
 0x6ba   : > { %1449 = vmatprep.subr.bf16.mxu0 %v2766_v35 }
 0x6bd   : > { %1450 = vmatpush1.bf16.msra.mxu0 %v2764_v39 }
 0x6be   : > { %1451 = vmatprep.subr.bf16.mxu0 %v2769_v40 }
 0x6c1   : > { %1452 = vmatpush1.bf16.msra.mxu0 %v2767_v41 }
 0x6c2   : > { %1453 = vmatprep.subr.bf16.mxu0 %v2772_v42  ;;  %v2797_v42 = vld [vmem:[%s3754_s5 + $0x100] ss:$8 sps:$4 sm:$0xff]  }
 0x6c5   : > { %1454 = vmatpush1.bf16.msra.mxu0 %v2770_v43 }
 0x6c6   : > { %1455 = vmatprep.subr.bf16.mxu0 %v2775_v44  ;;  %v2802_v44 = vld [vmem:[%s3754_s5 + $0x114] ss:$8 sps:$4 sm:$0xff]  }
 0x6c9   : > { %1456 = vmatpush1.bf16.msra.mxu0 %v2773_v45  ;;  %v2800_v45 = vld [vmem:[%s3754_s5 + $0x110] ss:$8 sps:$4 sm:$0xff]  }
 0x6ca   : > { %1457 = vmatprep.subr.bf16.mxu0 %v2778_v46 }
 0x6cd   : > { %1458 = vmatpush1.bf16.msra.mxu0 %v2776_v47 }
 0x6ce   : > { %1459 = vmatprep.subr.bf16.mxu0 %v2781_v48 }
 0x6d1   : > { %1460 = vmatpush1.bf16.msra.mxu0 %v2779_v49 }
 0x6d2   : > { %1461 = vmatprep.subr.bf16.mxu0 %v2784_v50 }
 0x6d5   : > { %1462 = vmatpush1.bf16.msra.mxu0 %v2782_v51 }
 0x6d6   : > { %1463 = vmatprep.subr.bf16.mxu0 %v2787_v52 }
 0x6d9   : > { %1464 = vmatpush1.bf16.msra.mxu0 %v2785_v53 }
 0x6da   : > { %1465 = vmatprep.subr.bf16.mxu0 %v2790_v54 }
 0x6dd   : > { %1466 = vmatpush1.bf16.msra.mxu0 %v2788_v55 }
 0x6de   : > { %1467 = vmatprep.subr.bf16.mxu0 %v2793_v57  ;;  %v1549_v57 = vld [vmem:[#allocation7] sm:$0xf] }
 0x6e1   : > { %1468 = vmatpush1.bf16.msra.mxu0 %v2791_v23 }
 0x6e2   : > { %1469 = vmatprep.subr.bf16.mxu0 %v2796_v63 }
 0x6e5   : > { %1470 = vmatpush1.bf16.msra.mxu0 %v2794_v0 }
 0x6e6   : > { %1480 = vmatprep.subr.bf16.mxu0 %v2799_v6 }
 0x726   : > { %v2733_v56 = vpop.permute.xlu1 %2732 }
 0x727   : > { %v2735_v60 = vunpack.i.h.bf16 %v2733_v56  ;;  %v2734_v5 = vunpack.i.l.bf16 %v2733_v56  ;;  %v1550_v56 = vld [vmem:[#allocation7 + $0x4] sm:$0xf] }
 0x729   : > { %1179 = vst.msk [vmem:[#allocation6 + $0x9] sm:$0xf] %vm1177_vm14, %v2735_v60  ;;  %1178 = vst.msk [vmem:[#allocation6 + $0x1] sm:$0xf] %vm1177_vm14, %v2734_v5 }
 0x730   : > { %v1181_v9 = vld [vmem:[#allocation6 + $0x8] sm:$0x3f]  ;;  %v1180_v12 = vld [vmem:[#allocation6] sm:$0x3f] }
 0x731   : > { %v1185_v19 = vrot.slane %v1181_v9, 1  ;;  %v1184_v21 = vrot.slane %v1180_v12, 1  ;;  %v1193_v59 = vrot.slane %v1181_v9, 2  ;;  %v1192_v62 = vrot.slane %v1180_v12, 2 }
 0x733   : > { %1188 = vrot.lane.b32.xlu1 %v1185_v19, %s3087_s24  ;;  %1186 = vrot.lane.b32.xlu0 %v1184_v21, %s3087_s24 }
 0x737   : > { %1196 = vrot.lane.b32.xlu1 %v1193_v59, %s3091_s27  ;;  %1194 = vrot.lane.b32.xlu0 %v1192_v62, %s3091_s27 }
 0x7a5   : > { %v1189_v25 = vpop.permute.xlu1 %1188  ;;  %v1187_v28 = vpop.permute.xlu0 %1186 }
 0x7a6   : > { %v1201_v29 = vsel %vm833_vm7, %v1181_v9, %v1189_v25  ;;  %v1200_v30 = vsel %vm833_vm7, %v1180_v12, %v1187_v28  ;;  %vm3778_vm7 = vcmask 261120  }
 0x7a7   : > { %v2479_v33 = vcombine.low %v1200_v30, %v1201_v29  ;;  %vm3779_vm11 = vmmov %vm3778_vm7 }
 0x7a8   : > { %vm3783_vm14 = vmmov %vm3778_vm7 }
 0x7a9   : > { %v1197_v31 = vpop.permute.xlu1 %1196  ;;  %v1195_v32 = vpop.permute.xlu0 %1194  ;;  %v1217_v43 = vpack.c.bf16 %v2479_v33, %v2479_v33 }
 0x7aa   : > { %v1204_v35 = vsel %vm1202_vm15, %v1189_v25, %v1197_v31  ;;  %v1203_v39 = vsel %vm1202_vm15, %v1187_v28, %v1195_v32  ;;  %v1213_v46 = vcombine.low %v1195_v32, %v1197_v31 }
 0x7ab   : > { %v2480_v40 = vcombine.low %v1203_v39, %v1204_v35 }
 0x7ac   : > { %v1219_v47 = vpack.c.bf16 %v1213_v46, %v1213_v46  ;;  %v2806_v46 = vld [vmem:[#allocation13 + $0x20] ss:$16 sps:$4 sm:$0xff]  }
 0x7ad   : > { %v1218_v41 = vpack.c.bf16 %v2480_v40, %v2480_v40 }
 0x7af   : > { %1471 = vmatprep.mubr.bf16.mxu0 %v1218_v41 }
 0x7b0   : > { %1472 = vmatmul.mubr.bf16.vlgmr.msra.gmra.mrb[4].mxu0 %v1217_v43 }
 0x7b1   : > { %1481 = vmatpush1.bf16.msra.mxu0 %v2797_v42  ;;  %1512 = vmatprep.mubr.bf16.mxu0 %v3088_v27 }
 0x7b2   : > { %1482 = vmatprep.subr.bf16.mxu0 %v2802_v44 }
 0x7b5   : > { %1483 = vmatpush1.bf16.msra.mxu0 %v2800_v45  ;;  %v2803_v45 = vld [vmem:[#allocation13] ss:$16 sps:$4 sm:$0xff]  }
 0x7bc   : > { %2517 = vmatmul.mubr.msk.bf16.vlgmr.msra.gmra.mrb[4].mxu0 %vm3778_vm7, %v1219_v47  ;;  %v2811_v47 = vld [vmem:[#allocation13 + $0x44] ss:$16 sps:$4 sm:$0xff]  }
 0x88f   : > { %v1514_v48 = vpop.f32.mrb[4].mxu0 }
 0x890   : > { %v2655_v49 = vadd.f32 %v1514_v48, %v3233_v10  ;;  %v1516_v50 = vpop.f32.mrb[5].mxu0  ;;  %v2812_v48 = vld [vmem:[#allocation13 + $0x60] ss:$16 sps:$4 sm:$0xff]  }
 0x891   : > { %v2656_v51 = vadd.f32 %v1516_v50, %v3235_v11  ;;  %v1518_v52 = vpop.f32.mrb[6].mxu0 }
 0x892   : > { %v1519_v53 = vpop.f32.mrb[7].mxu0 }
 0x893   : > { %v1523_v54 = vcombine.low %v2655_v49, %v2656_v51  ;;  %v1524_v55 = vcombine.high %v2655_v49, %v2656_v51  ;;  %v2815_v51 = vld [vmem:[#allocation13 + $0x80] ss:$16 sps:$4 sm:$0xff]  }
 0x895   : > { %1541 = vrot.lane.b32.xlu1 %v1524_v55, %s3091_s27  ;;  %1539 = vrot.lane.b32.xlu0 %v1523_v54, %s3091_s27  ;;  %v2518_v60 = vmul.f32 -1.442695, %v1523_v54  ;;  %v2519_v5 = vmul.f32 -1.442695, %v1524_v55  ;;  %v2820_v54 = vld [vmem:[#allocation13 + $0xa4] ss:$16 sps:$4 sm:$0xff]  }
 0x897   : > { %2931 = vpow2.f32 %v2518_v60 }
 0x898   : > { %2933 = vpow2.f32 %v2519_v5  ;;  %v2818_v5 = vld [vmem:[#allocation13 + $0xa0] ss:$16 sps:$4 sm:$0xff]  }
 0x899   : > { %1555 = vrot.lane.b32.xlu1 %v1550_v56, %s3091_s27  ;;  %1553 = vrot.lane.b32.xlu0 %v1549_v57, %s3091_s27 }
 0x8a1   : > { %v2932_v23 = vpop.eup %2931 }
 0x8a2   : > { %v2934_v63 = vpop.eup %2933  ;;  %v1533_v0 = vadd.f32 1.0, %v2932_v23 }
 0x8a3   : > { %v1534_v6 = vadd.f32 1.0, %v2934_v63 }
 0x8a4   : > { %2935 = vrcp.f32 %v1533_v0  ;;  %v2823_v0 = vld [vmem:[#allocation13 + $0xc4] ss:$16 sps:$4 sm:$0xff]  }
 0x8a5   : > { %2937 = vrcp.f32 %v1534_v6 }
 0x8ae   : > { %v2936_v59 = vpop.eup %2935 }
 0x8af   : > { %v2938_v62 = vpop.eup %2937  ;;  %v1588_v50 = vrot.slane %v2936_v59, 4 }
 0x8b0   : > { %v1589_v49 = vrot.slane %v2938_v62, 4 }
 0x907   : > { %v1542_v9 = vpop.permute.xlu1 %1541  ;;  %v1540_v12 = vpop.permute.xlu0 %1539 }
 0x908   : > { %v1544_v19 = vrot.slane %v1542_v9, 4  ;;  %v1543_v21 = vrot.slane %v1540_v12, 4 }
 0x90a   : > { %2939 = vtanh.f32 %v1544_v19 }
 0x90b   : > { %2941 = vtanh.f32 %v1543_v21  ;;  %v1556_v31 = vpop.permute.xlu1 %1555  ;;  %v1554_v32 = vpop.permute.xlu0 %1553 }
 0x90c   : > { %v1560_v33 = vmul.f32 %v2938_v62, %v1556_v31  ;;  %v1559_v35 = vmul.f32 %v2936_v59, %v1554_v32  ;;  %v2826_v32 = vld [vmem:[#allocation13 + $0xe4] ss:$16 sps:$4 sm:$0xff]  }
 0x914   : > { %v2940_v25 = vpop.eup %2939 }
 0x915   : > { %v2942_v28 = vpop.eup %2941  ;;  %v1562_v29 = vmul.f32 %v2940_v25, %v2938_v62 }
 0x916   : > { %v1561_v30 = vmul.f32 %v2942_v28, %v2936_v59 }
 0x917   : > { %1567 = vrot.lane.b32.xlu1 %v1562_v29, %s3091_s27  ;;  %v2821_v29 = vld [vmem:[#allocation13 + $0xc0] ss:$16 sps:$4 sm:$0xff]  }
 0x918   : > { %1565 = vrot.lane.b32.xlu0 %v1561_v30, %s3091_s27 }
 0x989   : > { %v1568_v39 = vpop.permute.xlu1 %1567 }
 0x98a   : > { %v3637_v40 = vadd.f32 %v1568_v39, %v1560_v33  ;;  %v1566_v41 = vpop.permute.xlu0 %1565 }
 0x98b   : > { %v1571_v42 = vadd.f32 %v1566_v41, %v1559_v35 }
 0x98c   : > { %2943 = vtanh.f32 %v3637_v40 }
 0x98d   : > { %2945 = vtanh.f32 %v1571_v42 }
 0x996   : > { %v2944_v43 = vpop.eup %2943 }
 0x997   : > { %v2946_v44 = vpop.eup %2945  ;;  %1596 = vrot.lane.b32.xlu1 %v2944_v43, %s3091_s27 }
 0x998   : > { %1594 = vrot.lane.b32.xlu0 %v2946_v44, %s3091_s27 }
 0x99b   : > { %446 = vrot.lane.b32.xlu1 %v3320_v20, %s3092_s13  ;;  %v2805_v20 = vld [vmem:[#allocation13 + $0x4] ss:$16 sps:$4 sm:$0xff]  }
 0x99c   : > { %1889 = vmatprep.subr.bf16.mxu1 %v2805_v20 }
 0x99d   : > { %1890 = vmatpush1.bf16.msra.mxu1 %v2803_v45  ;;  %v2824_v45 = vld [vmem:[#allocation13 + $0xe0] ss:$16 sps:$4 sm:$0xff]  }
 0x99f   : > { %450 = vrot.lane.b32.xlu1 %v3318_v18, %s3092_s13  ;;  %v2808_v18 = vld [vmem:[#allocation13 + $0x24] ss:$16 sps:$4 sm:$0xff]  }
 0x9a0   : > { %1891 = vmatprep.subr.bf16.mxu1 %v2808_v18 }
 0x9a1   : > { %1892 = vmatpush1.bf16.msra.mxu1 %v2806_v46 }
 0x9a2   : > { %1893 = vmatprep.subr.bf16.mxu1 %v2811_v47 }
 0x9a3   : > { %491 = vrot.lane.b32.xlu1 %v3341_v38, %s3093_s14  ;;  %v2809_v38 = vld [vmem:[#allocation13 + $0x40] ss:$16 sps:$4 sm:$0xff]  }
 0x9a5   : > { %1894 = vmatpush1.bf16.msra.mxu1 %v2809_v38  ;;  %v3094_v38 = vmov 1934713408  }
 0x9a7   : > { %495 = vrot.lane.b32.xlu1 %v3339_v36, %s3093_s14  ;;  %v2814_v36 = vld [vmem:[#allocation13 + $0x64] ss:$16 sps:$4 sm:$0xff]  }
 0x9a8   : > { %1895 = vmatprep.subr.bf16.mxu1 %v2814_v36  ;;  %v1684_v36 = vunpack.c.l.s4 %v3094_v38 }
 0x9a9   : > { %1896 = vmatpush1.bf16.msra.mxu1 %v2812_v48 }
 0x9ab   : > { %1002 = vrot.lane.b32.xlu1 %v3465_v58, %s3087_s24  ;;  %v2817_v58 = vld [vmem:[#allocation13 + $0x84] ss:$16 sps:$4 sm:$0xff]  }
 0x9ac   : > { %1897 = vmatprep.subr.bf16.mxu1 %v2817_v58 }
 0x9ad   : > { %1898 = vmatpush1.bf16.msra.mxu1 %v2815_v51 }
 0x9ae   : > { %1899 = vmatprep.subr.bf16.mxu1 %v2820_v54  ;;  %v2829_v54 = vld [vmem:[#allocation13 + $0xc] ss:$16 sps:$4 sm:$0xff]  }
 0x9af   : > { %1025 = vrot.lane.b32.xlu1 %v3473_v1, %s3083_s18 }
 0x9b1   : > { %1900 = vmatpush1.bf16.msra.mxu1 %v2818_v5 }
 0x9b2   : > { %1901 = vmatprep.subr.bf16.mxu1 %v2823_v0 }
 0x9b3   : > { %1575 = vrot.lane.b32.xlu1 %v1571_v42, %s3091_s27 }
 0x9b5   : > { %1902 = vmatpush1.bf16.msra.mxu1 %v2821_v29  ;;  %v2832_v29 = vld [vmem:[#allocation13 + $0x2c] ss:$16 sps:$4 sm:$0xff]  }
 0x9b6   : > { %1903 = vmatprep.subr.bf16.mxu1 %v2826_v32 }
 0x9b9   : > { %1904 = vmatpush1.bf16.msra.mxu1 %v2824_v45 }
 0x9ba   : > { %1930 = vmatprep.subr.bf16.mxu1 %v2829_v54  ;;  %v2859_v54 = vld [vmem:[#allocation15 + $0x50] sm:$0xff]  }
 0xa09   : > { %v1597_v1 = vpop.permute.xlu1 %1596 }
 0xa0a   : > { %v3655_v52 = vmul.f32 %v1597_v1, %v1589_v49  ;;  %v1595_v53 = vpop.permute.xlu0 %1594 }
 0xa0b   : > { %v1600_v55 = vmul.f32 %v1595_v53, %v1588_v50 }
 0xa0c   : > { %v1627_v56 = vrot.slane %v3655_v52, %v3337_v34 }
 0xa0d   : > { %v1619_v57 = vrot.slane %v1600_v55, %v3337_v34  ;;  %1604 = vrot.lane.b32.xlu1 %v1600_v55, %s3090_s26  ;;  %v447_v60 = vpop.permute.xlu1 %446 }
 0xa0e   : > { %v1628_v23 = vcombine.high %v1627_v56, %v1627_v56  ;;  %v1648_v63 = vsel %vm1633_vm4, %v1627_v56, -inf  ;;  %459 = vst.msk [vmem:[#allocation3] sm:$0xff] %vm96_vm2, %v447_v60  ;;  %v1685_v56 = vunpack.c.0.s8 %v1684_v36  ;;  %v2851_v36 = vld [vmem:[#allocation15 + $0x40] sm:$0xff]  }
 0xa0f   : > { %v1649_v6 = vrot.slane %v1648_v63, 4  ;;  %v1620_v9 = vcombine.high %v1619_v57, %v1619_v57  ;;  %v1634_v12 = vsel %vm1633_vm4, %v1619_v57, -inf  ;;  %2599 = vmatprep.subr.bf16.mxu0 %v2851_v36 }
 0xa10   : > { %v1655_v19 = vsel %vm1633_vm4, %v1628_v23, -inf  ;;  %v1635_v21 = vrot.slane %v1634_v12, 4 }
 0xa11   : > { %v1650_v59 = vmax.f32 %v1648_v63, %v1649_v6  ;;  %v1656_v62 = vrot.slane %v1655_v19, 4  ;;  %v1641_v25 = vsel %vm1633_vm4, %v1620_v9, -inf  ;;  %v451_v28 = vpop.permute.xlu1 %450  ;;  %v1688_v9 = vsub.s32 %v1685_v56, %v3204_v2  ;;  %v2861_v56 = vld [vmem:[#allocation15 + $0xd0] sm:$0xff]  }
 0xa12   : > { %v1636_v30 = vmax.f32 %v1634_v12, %v1635_v21  ;;  %v1642_v31 = vrot.slane %v1641_v25, 4  ;;  %461 = vst.msk [vmem:[#allocation3 + $0x10] sm:$0xff] %vm96_vm2, %v451_v28 }
 0xa13   : > { %v1651_v33 = vrot.slane %v1650_v59, 2  ;;  %v1657_v35 = vmax.f32 %v1655_v19, %v1656_v62 }
 0xa14   : > { %v1637_v39 = vrot.slane %v1636_v30, 2  ;;  %v1643_v41 = vmax.f32 %v1641_v25, %v1642_v31  ;;  %v2838_v31 = vld [vmem:[#allocation13 + $0x6c] ss:$16 sps:$4 sm:$0xff]  }
 0xa15   : > { %v1652_v42 = vmax.f32 %v1650_v59, %v1651_v33  ;;  %v1658_v43 = vrot.slane %v1657_v35, 2  ;;  %v492_v44 = vpop.permute.xlu1 %491  ;;  %v2836_v33 = vld [vmem:[#allocation13 + $0x68] ss:$16 sps:$4 sm:$0xff]  }
 0xa16   : > { %v1638_v20 = vmax.f32 %v1636_v30, %v1637_v39  ;;  %v1644_v18 = vrot.slane %v1643_v41, 2  ;;  %504 = vst.msk [vmem:[#allocation2 + $0x1] sm:$0xff] %vm503_vm0, %v492_v44  ;;  %v2833_v30 = vld [vmem:[#allocation13 + $0x48] ss:$16 sps:$4 sm:$0xff]   ;;  %v2847_v44 = vld [vmem:[#allocation13 + $0xcc] ss:$16 sps:$4 sm:$0xff]  }
 0xa17   : > { %v1653_v46 = vrot.slane %v1652_v42, 1  ;;  %v1659_v47 = vmax.f32 %v1657_v35, %v1658_v43  ;;  %v2841_v35 = vld [vmem:[#allocation13 + $0x8c] ss:$16 sps:$4 sm:$0xff]   ;;  %v2842_v43 = vld [vmem:[#allocation13 + $0xa8] ss:$16 sps:$4 sm:$0xff]  }
 0xa18   : > { %v1639_v48 = vrot.slane %v1638_v20, 1  ;;  %v1645_v58 = vmax.f32 %v1643_v41, %v1644_v18  ;;  %v2844_v41 = vld [vmem:[#allocation13 + $0xac] ss:$16 sps:$4 sm:$0xff]  }
 0xa19   : > { %v1654_v49 = vmax.f32 %v1652_v42, %v1653_v46  ;;  %v1660_v1 = vrot.slane %v1659_v47, 1  ;;  %v496_v50 = vpop.permute.xlu1 %495  ;;  %v2850_v18 = vld [vmem:[#allocation13 + $0xec] ss:$16 sps:$4 sm:$0xff]  }
 0xa1a   : > { %v1640_v51 = vmax.f32 %v1638_v20, %v1639_v48  ;;  %v1646_v53 = vrot.slane %v1645_v58, 1  ;;  %506 = vst.msk [vmem:[#allocation2 + $0x19] sm:$0xff] %vm503_vm0, %v496_v50  ;;  %v2845_v20 = vld [vmem:[#allocation13 + $0xc8] ss:$16 sps:$4 sm:$0xff]   ;;  %v2852_v48 = vld [vmem:[#allocation15] sm:$0xff]  }
 0xa1b   : > { %v1661_v55 = vmax.f32 %v1659_v47, %v1660_v1  ;;  %vm1664_vm1 = vcmp.gt.f32.partialorder %v1654_v49, 0.05  ;;  %v2848_v47 = vld [vmem:[#allocation13 + $0xe8] ss:$16 sps:$4 sm:$0xff]   ;;  %v2854_v49 = vld [vmem:[#allocation15 + $0x80] sm:$0xff]   ;;  %2600 = vmatpush3.bf16.msra.mxu0 %v2852_v48 }
 0xa1c   : > { %v1647_v57 = vmax.f32 %v1645_v58, %v1646_v53  ;;  %vm1662_vm13 = vcmp.gt.f32.partialorder %v1640_v51, 0.05  ;;  %v2522_v5 = vsel %vm1664_vm1, 1.0, %v3086_v61  ;;  %v2853_v58 = vld [vmem:[#allocation15 + $0xc0] sm:$0xff]   ;;  %v2855_v1 = vld [vmem:[#allocation15 + $0x48] sm:$0xff]  }
 0xa1d   : > { %vm1665_vm6 = vcmp.gt.f32.partialorder %v1661_v55, 0.05  ;;  %v1003_v60 = vpop.permute.xlu1 %1002  ;;  %v2520_v63 = vsel %vm1662_vm13, 1.0, %v3086_v61  ;;  %v2857_v50 = vld [vmem:[#allocation15 + $0xc8] sm:$0xff]   ;;  %2601 = vmatprep.subr.bf16.mxu0 %v2855_v1  ;;  %v2860_v55 = vld [vmem:[#allocation15 + $0x10] sm:$0xff]  }
 0xa1e   : > { %vm1663_vm8 = vcmp.gt.f32.partialorder %v1647_v57, 0.05  ;;  %1009 = vst.msk [vmem:[#allocation5] sm:$0xff] %vm3779_vm11, %v1003_v60  ;;  %v2523_v23 = vsel %vm1665_vm6, 1.0, %v3086_v61  ;;  %v2856_v51 = vld [vmem:[#allocation15 + $0x8] sm:$0xff]   ;;  %v2862_v57 = vld [vmem:[#allocation15 + $0x90] sm:$0xff]  }
 0xa1f   : > { %v2521_v0 = vsel %vm1663_vm8, 1.0, %v3086_v61  ;;  %v1679_v6 = vsel %vm3780_vm3, %v2523_v23, %v2522_v5  ;;  %v2858_v53 = vld [vmem:[#allocation15 + $0x88] sm:$0xff]   ;;  %2602 = vmatpush3.bf16.msra.mxu0 %v2856_v51  ;;  %v2863_v60 = vld [vmem:[#allocation15 + $0x58] sm:$0xff]  }
 0xa20   : > { %v1678_v12 = vsel %vm3781_vm5, %v2521_v0, %v2520_v63  ;;  %2603 = vmatprep.subr.bf16.mxu0 %v2859_v54  ;;  %v2864_v5 = vld [vmem:[#allocation15 + $0x18] sm:$0xff]   ;;  %v2867_v0 = vld [vmem:[#allocation15 + $0x60] sm:$0xff]  }
 0xa21   : > { %v1026_v19 = vpop.permute.xlu1 %1025  ;;  %v1682_v21 = vcombine.low %v1678_v12, %v1679_v6  ;;  %v2865_v23 = vld [vmem:[#allocation15 + $0xd8] sm:$0xff]   ;;  %v2868_v6 = vld [vmem:[#allocation15 + $0x20] sm:$0xff]  }
 0xa22   : > { %1032 = vst.msk [vmem:[#allocation4 + $0x1] sm:$0xff] %vm1031_vm12, %v1026_v19  ;;  %v2866_v63 = vld [vmem:[#allocation15 + $0x98] sm:$0xff]   ;;  %v2870_v12 = vld [vmem:[#allocation15 + $0xa0] sm:$0xff]   ;;  %v2871_v19 = vld [vmem:[#allocation15 + $0x68] sm:$0xff]  }
 0xa23   : > { %v1689_v59 = vrot.slane %v1682_v21, %v1688_v9  ;;  %2604 = vmatpush3.bf16.msra.mxu0 %v2860_v55  ;;  %v2869_v9 = vld [vmem:[#allocation15 + $0xe0] sm:$0xff]   ;;  %v2872_v21 = vld [vmem:[#allocation15 + $0x28] sm:$0xff]  }
 0xa24   : > { %2605 = vmatprep.subr.bf16.mxu0 %v2863_v60 }
 0xa25   : > { %v1576_v62 = vpop.permute.xlu1 %1575  ;;  %v1690_v25 = vcombine.high %v1689_v59, %v3086_v61 }
 0xa26   : > { %1582 = vst.msk [vmem:[#allocation7] sm:$0xf] %vm3782_vm9, %v1576_v62  ;;  %v2874_v62 = vld [vmem:[#allocation15 + $0xa8] sm:$0xff]  }
 0xa27   : > { %1692 = vrot.lane.b32.xlu0 %v1690_v25, %s3091_s27  ;;  %2606 = vmatpush3.bf16.msra.mxu0 %v2864_v5  ;;  %v2875_v25 = vld [vmem:[#allocation15 + $0x70] sm:$0xff]  }
 0xa28   : > { %2607 = vmatprep.subr.bf16.mxu0 %v2867_v0  ;;  %v2367_v5 = vld [vmem:[#allocation9] sm:$0x3] }
 0xa2b   : > { %448 = vrot.lane.b32.xlu0 %v3329_v26, %s3092_s13  ;;  %2608 = vmatpush3.bf16.msra.mxu0 %v2868_v6 }
 0xa2c   : > { %2609 = vmatprep.subr.bf16.mxu0 %v2871_v19 }
 0xa2f   : > { %452 = vrot.lane.b32.xlu0 %v3326_v24, %s3092_s13  ;;  %2610 = vmatpush3.bf16.msra.mxu0 %v2872_v21 }
 0xa30   : > { %2611 = vmatprep.subr.bf16.mxu0 %v2875_v25 }
 0xa33   : > { %493 = vrot.lane.b32.xlu0 %v3368_v4, %s3093_s14 }
 0xa37   : > { %497 = vrot.lane.b32.xlu0 %v3365_v3, %s3093_s14  ;;  %v2827_v3 = vld [vmem:[#allocation13 + $0x8] ss:$16 sps:$4 sm:$0xff]  }
 0xa3b   : > { %1004 = vrot.lane.b32.xlu0 %v3468_v22, %s3087_s24 }
 0xa3f   : > { %1027 = vrot.lane.b32.xlu0 %v3479_v37, %s3083_s18  ;;  %v2830_v37 = vld [vmem:[#allocation13 + $0x28] ss:$16 sps:$4 sm:$0xff]   ;;  %s2592_s18 = sshll.u32 %s3071_s4, 1  ;;  %s178_s4 = sadd.s32 1, %s3071_s4  }
 0xa40   : > { %s2382_s24 = scalar_lea.vmem [#allocation17], %s2592_s18  ;;  %p175_p10 = scmp.ge.s32.totalorder %s178_s4, 8  }
 0xa43   : > { %1577 = vrot.lane.b32.xlu0 %v3637_v40, %s3091_s27  ;;  %v2835_v40 = vld [vmem:[#allocation13 + $0x4c] ss:$16 sps:$4 sm:$0xff]   ;;  %s3095_s27 = smov (%p175_p10), [#allocation16]  }
 0xa44   :  { %s2389_s15 = sshll.u32 (%p175_p10), %s3095_s27, 4  ;;  %s2390_s15 = int_to_ptr.vmem [resolvable:$true] %s2389_s15 }
 0xa45   :  { %s3013_s16 = scalar_lea.vmem (%p175_p10), %s2390_s15, 256  ;;  %p3018_p12 = scmp.lt.s32.totalorder (%p175_p10), %s2390_s15, %s2390_s15 }
 0xa46   :  { %p3014_p11 = scmp.ne.s32.totalorder (%p175_p10), %s2390_s15, %s3013_s16  ;;  %p3019_p13 = scmp.lt.s32.totalorder (%p175_p10), %s3013_s16, %s3013_s16 }
 0xa47   : > { %1606 = vrot.lane.b32.xlu0 %v3655_v52, %s3090_s26  ;;  %s2380_s26 = scalar_lea.vmem [#allocation16], %s2592_s18 }
 0xa48   :  { %p3020_p0 = por (%p175_p10), %p3019_p13, %p3018_p12 }
 0xa4a   :  { %p3021_p1 = pnand (%p175_p10), %p3020_p0, %p3014_p11 }
 0xa7f   : > { %v1605_v24 = vpop.permute.xlu1 %1604 }
 0xa80   : > { %1611 = vst.msk [vmem:[#allocation6 + $0x1] sm:$0xf] %vm1610_vm10, %v1605_v24  ;;  %v2877_v24 = vld [vmem:[#allocation15 + $0xf0] sm:$0xff]  }
 0xa99   : > { %v1693_v26 = vpop.permute.xlu0 %1692 }
 0xa9a   : > { %v1695_v4 = vsel %vm1202_vm15, %v1689_v59, %v1693_v26  ;;  %vm3784_vm15 = vmmov %vm3782_vm9  ;;  %v2873_v59 = vld [vmem:[#allocation15 + $0xe8] sm:$0xff]   ;;  %v2876_v26 = vld [vmem:[#allocation15 + $0x30] sm:$0xff]  }
 0xa9b   : > { %v1696_v28 = vpack.c.bf16 %v1695_v4, %v1695_v4  ;;  %v2879_v4 = vld [vmem:[#allocation15 + $0x78] sm:$0xff]   ;;  %2612 = vmatpush3.bf16.msra.mxu0 %v2876_v26 }
 0xa9c   : > { %2613 = vmatprep.subr.bf16.mxu0 %v2879_v4 }
 0xa9d   : > { %1922 = vmatmul.mubr.bf16.vlgmr.msra.gmra.mrb[4].mxu1 %v1696_v28  ;;  %v449_v22 = vpop.permute.xlu0 %448 }
 0xa9e   : > { %1931 = vmatpush1.bf16.msra.mxu1 %v2827_v3  ;;  %460 = vst.msk [vmem:[#allocation3 + $0x8] sm:$0xff] %vm96_vm2, %v449_v22  ;;  %1962 = vmatprep.mubr.bf16.mxu1 %v3088_v27  ;;  %v2839_v27 = vld [vmem:[#allocation13 + $0x88] ss:$16 sps:$4 sm:$0xff]   ;;  %v2878_v3 = vld [vmem:[#allocation15 + $0xb0] sm:$0xff]  }
 0xa9f   : > { %1932 = vmatprep.subr.bf16.mxu1 %v2832_v29  ;;  %v2880_v29 = vld [vmem:[#allocation15 + $0x38] sm:$0xff]  }
 0xaa0   : > { %2614 = vmatpush3.bf16.msra.mxu0 %v2880_v29  ;;  %v2882_v22 = vld [vmem:[#allocation15 + $0xb8] sm:$0xff]  }
 0xaa1   : > { %v453_v52 = vpop.permute.xlu0 %452 }
 0xaa2   : > { %1933 = vmatpush1.bf16.msra.mxu1 %v2830_v37  ;;  %462 = vst.msk [vmem:[#allocation3 + $0x18] sm:$0xff] %vm96_vm2, %v453_v52 }
 0xaa3   : > { %1934 = vmatprep.subr.bf16.mxu1 %v2835_v40 }
 0xaa5   : > { %v494_v32 = vpop.permute.xlu0 %493 }
 0xaa6   : > { %1935 = vmatpush1.bf16.msra.mxu1 %v2833_v30  ;;  %505 = vst.msk [vmem:[#allocation2 + $0x9] sm:$0xff] %vm503_vm0, %v494_v32 }
 0xaa7   : > { %1936 = vmatprep.subr.bf16.mxu1 %v2838_v31 }
 0xaa9   : > { %v498_v39 = vpop.permute.xlu0 %497 }
 0xaaa   : > { %1937 = vmatpush1.bf16.msra.mxu1 %v2836_v33  ;;  %507 = vst.msk [vmem:[#allocation2 + $0x21] sm:$0xff] %vm503_vm0, %v498_v39  ;;  %vm2368_vm0 = vcmp.gt.f32.partialorder %v2367_v5, 0.05 }
 0xaab   : > { %1938 = vmatprep.subr.bf16.mxu1 %v2841_v35  ;;  %v1971_v35 = vld [vmem:[#allocation8] sm:$0xff] }
 0xaac   : > { %vm1972_vm7 = vcmp.gt.f32.partialorder %v1971_v35, 0.05 }
 0xaad   : > { %v1005_v42 = vpop.permute.xlu0 %1004 }
 0xaae   : > { %1939 = vmatpush1.bf16.msra.mxu1 %v2839_v27  ;;  %1010 = vst.msk [vmem:[#allocation5 + $0x8] sm:$0xff] %vm3783_vm14, %v1005_v42 }
 0xaaf   : > { %1940 = vmatprep.subr.bf16.mxu1 %v2844_v41 }
 0xab1   : > { %v1028_v45 = vpop.permute.xlu0 %1027 }
 0xab2   : > { %1941 = vmatpush1.bf16.msra.mxu1 %v2842_v43  ;;  %1033 = vst.msk [vmem:[#allocation4 + $0x11] sm:$0xff] %vm1031_vm12, %v1028_v45 }
 0xab3   : > { %1942 = vmatprep.subr.bf16.mxu1 %v2847_v44 }
 0xab5   : > { %v1578_v46 = vpop.permute.xlu0 %1577 }
 0xab6   : > { %1943 = vmatpush1.bf16.msra.mxu1 %v2845_v20  ;;  %1583 = vst.msk [vmem:[#allocation7 + $0x4] sm:$0xf] %vm3784_vm15, %v1578_v46  ;;  %v2556_v20 = vsel %vm1972_vm7, 1.0, %v3086_v61  ;;  %v1975_v46 = vmul.f32 0.9181805, %v1971_v35 }
 0xab7   : > { %1944 = vmatprep.subr.bf16.mxu1 %v2850_v18  ;;  %v1999_v36 = vmul.f32 0.05, %v2556_v20 }
 0xab9   : > { %v1607_v38 = vpop.permute.xlu0 %1606 }
 0xaba   : > { %1945 = vmatpush1.bf16.msra.mxu1 %v2848_v47  ;;  %1612 = vst.msk [vmem:[#allocation6 + $0x9] sm:$0xf] %vm1610_vm10, %v1607_v38 }
 0xabb   : > { %2621 = vmatprep.subr.bf16.mxu1 %v2853_v58 }
 0xabd   : > { %1963 = vmatmul.mubr.bf16.vlgmr.msra.gmra.mrb[8].mxu1 %v1696_v28  ;;  %v2881_v28 = vld [vmem:[#allocation15 + $0xf8] sm:$0xff]  }
 0xabe   : > { %2622 = vmatpush3.bf16.msra.mxu1 %v2854_v49 }
 0xabf   : > { %2623 = vmatprep.subr.bf16.mxu1 %v2857_v50 }
 0xac2   : > { %2624 = vmatpush3.bf16.msra.mxu1 %v2858_v53 }
 0xac3   : > { %2625 = vmatprep.subr.bf16.mxu1 %v2861_v56 }
 0xac6   : > { %2626 = vmatpush3.bf16.msra.mxu1 %v2862_v57 }
 0xac7   : > { %2627 = vmatprep.subr.bf16.mxu1 %v2865_v23 }
 0xaca   : > { %2628 = vmatpush3.bf16.msra.mxu1 %v2866_v63 }
 0xacb   : > { %2629 = vmatprep.subr.bf16.mxu1 %v2869_v9 }
 0xace   : > { %2630 = vmatpush3.bf16.msra.mxu1 %v2870_v12 }
 0xacf   : > { %2631 = vmatprep.subr.bf16.mxu1 %v2873_v59 }
 0xad2   : > { %2632 = vmatpush3.bf16.msra.mxu1 %v2874_v62  ;;  %v2371_v62 = vmul.f32 0.9181805, %v2367_v5 }
 0xad3   : > { %2633 = vmatprep.subr.bf16.mxu1 %v2877_v24 }
 0xad6   : > { %2634 = vmatpush3.bf16.msra.mxu1 %v2878_v3 }
 0xad7   : > { %2635 = vmatprep.subr.bf16.mxu1 %v2881_v28 }
 0xada   : > { %2636 = vmatpush3.bf16.msra.mxu1 %v2882_v22 }
 0xb70   : > { %v1923_v37 = vpop.f32.mrb[4].mxu1 }
 0xb71   : > { %v1924_v40 = vadd.f32 %v1923_v37, %v3245_v14  ;;  %v1925_v52 = vpop.f32.mrb[5].mxu1 }
 0xb72   : > { %v1926_v30 = vadd.f32 %v1925_v52, %v3247_v15  ;;  %v1927_v31 = vpop.f32.mrb[6].mxu1 }
 0xb73   : > { %v1928_v32 = vpop.f32.mrb[7].mxu1 }
 0xb74   : > { %v1980_v33 = vcombine.low %v1924_v40, %v1926_v30 }
 0xb76   : > { %v1988_v18 = vrot.slane %v1980_v33, %v3337_v34 }
 0xb90   : > { %v1964_v39 = vpop.f32.mrb[8].mxu1 }
 0xb91   : > { %v1965_v27 = vadd.f32 %v1964_v39, %v3249_v16  ;;  %v1966_v41 = vpop.f32.mrb[9].mxu1 }
 0xb92   : > { %v1967_v42 = vadd.f32 %v1966_v41, %v3251_v17  ;;  %v1968_v43 = vpop.f32.mrb[10].mxu1 }
 0xb93   : > { %v1969_v44 = vpop.f32.mrb[11].mxu1 }
 0xb94   : > { %v1981_v45 = vcombine.low %v1965_v27, %v1967_v42 }
 0xb96   : > { %v1995_v47 = vrot.slane %v1981_v45, %v3337_v34 }
 0xb98   : > { %v1996_v38 = vcombine.low %v1988_v18, %v1995_v47 }
 0xb9a   : > { %v1998_v48 = vadd.f32 %v1996_v38, %v1975_v46 }
 0xb9c   : > { %v2000_v58 = vsub.f32 %v1998_v48, %v1999_v36 }
 0xb9e   : > { %2001 = vst [vmem:[#allocation8] sm:$0xff] %v2000_v58  ;;  %vm2002_vm4 = vcmp.gt.f32.partialorder %v2000_v58, 0.05 }
 0xb9f   : > { %v2557_v49 = vsel %vm2002_vm4, 1.0, %v3086_v61 }
 0xba0   : > { %v2013_v1 = vrot.slane %v2557_v49, %v3337_v34  ;;  %v2006_v50 = vcombine.high %v2557_v49, %v2557_v49 }
 0xba2   : > { %v2021_v51 = vcombine.high %v2013_v1, %v2013_v1  ;;  %v2020_v53 = vrot.slane %v2006_v50, %v3337_v34  ;;  %v2027_v56 = vpack.c.bf16 %v2013_v1, %v2013_v1  ;;  %v2590_v34 = vsel %vm2368_vm0, 1.0, %v3086_v61 }
 0xba3   : > { %v2373_v4 = vmul.f32 0.05, %v2590_v34 }
 0xba4   : > { %v2028_v54 = vpack.c.bf16 %v2021_v51, %v2021_v51  ;;  %v2022_v55 = vcombine.high %v2020_v53, %v2020_v53  ;;  %v2029_v60 = vpack.c.bf16 %v2020_v53, %v2020_v53 }
 0xba6   : > { %2319 = vmatprep.mubr.bf16.mxu0 %v2028_v54  ;;  %v2030_v57 = vpack.c.bf16 %v2022_v55, %v2022_v55 }
 0xba7   : > { %2320 = vmatmul.mubr.bf16.vlgmr.msra.gmra.mrb[8].mxu0 %v2027_v56 }
 0xba8   : > { %2359 = vmatprep.mubr.bf16.mxu1 %v2030_v57 }
 0xba9   : > { %2360 = vmatmul.mubr.bf16.vlgmr.msra.gmra.mrb[12].mxu1 %v2029_v60 }
 0xc7a   : > { %v2615_v23 = vpop.f32.mrb[8].mxu0 }
 0xc7b   : > { %v2616_v63 = vpop.f32.mrb[9].mxu0 }
 0xc7c   : > { %v2617_v0 = vadd.f32 %v2616_v63, %v2615_v23  ;;  %v2618_v6 = vpop.f32.mrb[10].mxu0  ;;  %v2637_v9 = vpop.f32.mrb[12].mxu1 }
 0xc7d   : > { %v2619_v12 = vpop.f32.mrb[11].mxu0  ;;  %v2638_v19 = vpop.f32.mrb[13].mxu1 }
 0xc7e   : > { %v2322_v21 = vadd.f32 %v2617_v0, %v3243_v13  ;;  %v2639_v59 = vadd.f32 %v2638_v19, %v2637_v9  ;;  %v2640_v25 = vpop.f32.mrb[14].mxu1 }
 0xc7f   : > { %v2641_v24 = vpop.f32.mrb[15].mxu1 }
 0xc80   : > { %v2362_v26 = vadd.f32 %v2639_v59, %v2322_v21 }
 0xc82   : > { %v2372_v3 = vadd.f32 %v2371_v62, %v2362_v26  ;;  %177 = sbr.rel (!%p175_p10) target bundleno = 68 (0x44), region = 98 }
 0xc84   : > { %v2374_v28 = vsub.f32 %v2372_v3, %v2373_v4 }
 0xc86   : > { %2375 = vst [vmem:[#allocation9] sm:$0x3] %v2374_v28  ;;  %vm2376_vm1 = vcmp.gt.f32.partialorder %v2374_v28, 0.05  ;;  %2383 = vst [vmem:[%s2382_s24] sm:$0x3] %v2374_v28 }
 0xc87   : > { %v2591_v29 = vsel %vm2376_vm1, 1.0, %v3086_v61 }
 0xc88   : > { %2381 = vst [vmem:[%s2380_s26] sm:$0x3] %v2591_v29 }
 0xc89   :  { %3024 = shalt.err (!%p3021_p1)
}
 0xc8a   :  { %s3025_s20 = scalar_lea.hbm %s3760_s11, 256 }
 0xc8b   :  { %p3026_p2 = scmp.ne.s32.totalorder %s3760_s11, %s3025_s20  ;;  %p3029_p3 = scmp.lt.u32.totalorder %s3025_s20, %s3760_s11 }
 0xc8d   :  { %p3031_p4 = pnand %p3029_p3, %p3026_p2 }
 0xc8f   :  { %3034 = shalt.err (!%p3031_p4)
}
 0xc90   :  { %s3096_s0 = smov 32   ;;  %s3097_s1 = smov 2  }
 0xc91   :  { %2395 = dma.vmem_to_hbm [thread:$0]  %s2390_s15, 256, %s3760_s11, [#allocation12], %s3096_s0, %s3096_s0, %s3097_s1  }
 0xc92   :  { %s3098_s25 = smov [#allocation17]  }
 0xc93   :  { %s2401_s7 = sshll.u32 %s3098_s25, 4  ;;  %s2402_s7 = int_to_ptr.vmem [resolvable:$true] %s2401_s7 }
 0xc94   :  { %s3035_s22 = scalar_lea.vmem %s2402_s7, 256  ;;  %p3040_p6 = scmp.lt.s32.totalorder %s2402_s7, %s2402_s7 }
 0xc95   :  { %p3036_p5 = scmp.ne.s32.totalorder %s2402_s7, %s3035_s22  ;;  %p3041_p7 = scmp.lt.s32.totalorder %s3035_s22, %s3035_s22 }
 0xc97   :  { %p3042_p8 = por %p3041_p7, %p3040_p6 }
 0xc99   :  { %p3043_p9 = pnand %p3042_p8, %p3036_p5 }
 0xc9b   :  { %3046 = shalt.err (!%p3043_p9)
}
 0xc9c   :  { %s3047_s2 = scalar_lea.hbm %s3761_s12, 256 }
 0xc9d   :  { %p3048_p10 = scmp.ne.s32.totalorder %s3761_s12, %s3047_s2  ;;  %p3051_p11 = scmp.lt.u32.totalorder %s3047_s2, %s3761_s12 }
 0xc9f   :  { %p3053_p12 = pnand %p3051_p11, %p3048_p10 }
 0xca1   :  { %3056 = shalt.err (!%p3053_p12)
}
 0xca2   :  { %2407 = dma.vmem_to_hbm [thread:$0]  %s2402_s7, 256, %s3761_s12, [#allocation18], %s3096_s0, %s3096_s0, %s3097_s1  }
 0xca3   :  { %3065 = dma.done.wait [#allocation12], 256  }
 0xca4   :  { %3066 = vsyncadd [#allocation12], 4294967040 }
 0xca5   :  { %3067 = dma.done.wait [#allocation18], 256  }
 0xca6   :  { %3068 = vsyncadd [#allocation18], 4294967040 }
 0xca7   :  { %2414 = vsyncpa [#allocation11], 1 }
 0xca8   :  { %2415 = vsyncpa [#allocation14], 1 }
 0xca9   :  { %2416 = vsyncpa [#allocation12], 1 }
 0xcaa   :  { %2417 = vsyncpa [#allocation18], 1 }

</bundles_post_ra>
